<compile_context>
chip_gen: v7x
topology: tpu7x:2x2x1
jax: 0.10.0
libtpu: 0.0.40
codegen_flags: <defaults>
</compile_context>

<pallas_src>
import jax
import jax.numpy as jnp
from jax.experimental import pallas as pl
from jax.experimental.pallas import tpu as pltpu

IN_DIM = 4
OUT_DIM = 4      # CEBlock's `inputs + gap_branch` broadcast requires out_dim == in_dim
HEIGHT = 16
WIDTH = 16
BATCH = 2


# ----------------------------- BlockSpec helpers -----------------------------

def _batch_spec(shape):
    """Block over the leading (batch) dim, full extent on the rest."""
    n = len(shape)
    return pl.BlockSpec((1,) + tuple(shape[1:]), lambda b: (b,) + (0,) * (n - 1))


def _full_spec(shape):
    """Whole array as a single block (weights / folded-BN params)."""
    n = len(shape)
    return pl.BlockSpec(tuple(shape), lambda b: (0,) * n)


# --------------------------------- kernel ------------------------------------

def _ceblock_kernel(x_ref, w_gap_ref, w_out_ref, gap_bn_ref, out_bn_ref,
                    out_ref, zpad_ref):
    # x_ref     : (1, H, W, C)    NHWC input (unpadded)
    # w_gap_ref : (C, Cout)       1x1 conv weight
    # w_out_ref : (Cout, 9*C)     3x3 conv weight, col = (ky*3+kx)*C + ci
    # gap_bn_ref: (4, C)          rows: s_in, b_in, s_gap, b_gap (folded BN)
    # out_bn_ref: (Cout, 2)       cols: s_out, b_out (folded BN, channel-first)
    # out_ref   : (1, Cout, H*W)  channel-first, lane-dense spatial
    # zpad_ref  : (H+2, W+2, C)   VMEM scratch: zero-padded residual sum
    _, Hi, Wi, C = x_ref.shape
    _, Cout, _ = out_ref.shape

    xin = x_ref[0].astype(jnp.float32)                          # (H, W, C)

    # 1) Global average pool (two lane/sublane reductions on the VPU/XLU).
    col_sum = jnp.sum(xin, axis=0)                              # (W, C)
    pooled = jnp.sum(col_sum, axis=0, keepdims=True) * (1.0 / (Hi * Wi))  # (1, C)

    # 2) BN on the pooled vector, then gap_conv (1x1 conv + BN + ReLU).
    gap_bn = gap_bn_ref[...].astype(jnp.float32)                # (4, C)
    v = pooled * gap_bn[0:1, :] + gap_bn[1:2, :]                # (1, C)
    g = jnp.dot(v, w_gap_ref[...],
                precision=jax.lax.Precision.HIGHEST,
                preferred_element_type=jnp.float32)             # (1, Cout)
    g = jnp.maximum(g * gap_bn[2:3, :] + gap_bn[3:4, :], 0.0)

    # 3) Residual broadcast add over the whole tile (no masking needed: the
    #    conv zero padding is applied to z below, matching PyTorch semantics).
    z = xin + g.reshape(1, 1, Cout)                             # (H, W, C)

    # 4) Zero-pad z in VMEM scratch (border stays zero, interior gets z).
    zpad_ref[...] = jnp.zeros_like(zpad_ref)
    zpad_ref[1:Hi + 1, 1:Wi + 1, :] = z

    # 5) out_conv: 3x3 conv via in-VMEM im2col + one MXU dot, then BN + ReLU.
    taps = []
    for ky in range(3):
        for kx in range(3):
            taps.append(zpad_ref[ky:ky + Hi, kx:kx + Wi, :].reshape(Hi * Wi, C))
    patches = jnp.concatenate(taps, axis=1)                     # (H*W, 9*C)
    # (Cout, 9C) x (H*W, 9C) contracted on the shared minor dim -> (Cout, H*W)
    y = jax.lax.dot_general(w_out_ref[...], patches,
                            (((1,), (1,)), ((), ())),
                            precision=jax.lax.Precision.HIGHEST,
                            preferred_element_type=jnp.float32)
    out_bn = out_bn_ref[...].astype(jnp.float32)                # (Cout, 2)
    y = y * out_bn[:, 0:1] + out_bn[:, 1:2]
    out_ref[0] = jnp.maximum(y, 0.0).astype(out_ref.dtype)      # lane-dense store


# -------------------------------- wrapper -------------------------------------

def ceblock_pallas(x_nchw, kp):
    B, C, Hi, Wi = x_nchw.shape
    Cout = kp['w_out_t'].shape[0]
    assert C == Cout, (C, Cout)   # required by CEBlock's residual add

    x = jnp.transpose(x_nchw, (0, 2, 3, 1))                     # NCHW -> NHWC

    args = (x, kp['w_gap'], kp['w_out_t'], kp['gap_bn'], kp['out_bn'])
    out_flat = pl.pallas_call(
        _ceblock_kernel,
        out_shape=jax.ShapeDtypeStruct((B, Cout, Hi * Wi), x_nchw.dtype),
        grid=(B,),
        in_specs=[_batch_spec(x.shape)] + [_full_spec(a.shape) for a in args[1:]],
        out_specs=_batch_spec((B, Cout, Hi * Wi)),
        scratch_shapes=[pltpu.VMEM((Hi + 2, Wi + 2, C), jnp.float32)],
        compiler_params=pltpu.CompilerParams(dimension_semantics=("parallel",)),
    )(*args)
    return out_flat.reshape(B, Cout, Hi, Wi)                    # already NCHW


# --------------------------- parameters / reference ---------------------------

def init_params(key):
    ks = jax.random.split(key, 5)

    def w(k, shape):
        return jax.random.normal(k, shape, jnp.float32) * 0.1

    def bn(k, c, eps=1e-5):
        k1, k2, k3, k4 = jax.random.split(k, 4)
        gamma = jax.random.uniform(k1, (c,), jnp.float32, 0.5, 1.5)
        beta = jax.random.normal(k2, (c,), jnp.float32) * 0.1
        mean = jax.random.normal(k3, (c,), jnp.float32) * 0.1
        var = jax.random.uniform(k4, (c,), jnp.float32, 0.5, 1.5)
        scale = gamma / jnp.sqrt(var + eps)
        shift = beta - mean * scale
        return scale, shift

    p = {}
    p['bn_in'] = bn(ks[0], IN_DIM)                      # self.bn (on pooled x)
    p['w_gap'] = w(ks[1], (OUT_DIM, IN_DIM, 1, 1))      # gap_conv conv, OIHW
    p['bn_gap'] = bn(ks[2], OUT_DIM)
    p['w_out'] = w(ks[3], (OUT_DIM, OUT_DIM, 3, 3))     # out_conv conv, OIHW
    p['bn_out'] = bn(ks[4], OUT_DIM)
    return p


def to_kernel_params(p):
    kp = {}
    # 1x1 conv: (Cout, Cin, 1, 1) -> (Cin, Cout)
    kp['w_gap'] = p['w_gap'][:, :, 0, 0].T
    # 3x3 conv: OIHW -> (Cout, ky, kx, Cin) -> (Cout, 9*Cin), col = (ky*3+kx)*Cin + ci
    kp['w_out_t'] = p['w_out'].transpose(0, 2, 3, 1).reshape(OUT_DIM, 9 * OUT_DIM)
    s_in, b_in = p['bn_in']
    s_gap, b_gap = p['bn_gap']
    kp['gap_bn'] = jnp.stack([s_in, b_in, s_gap, b_gap], axis=0)   # (4, C)
    s_out, b_out = p['bn_out']
    kp['out_bn'] = jnp.stack([s_out, b_out], axis=1)               # (Cout, 2)
    return kp


def ceblock_ref(x, p):
    def conv(x, w, pad):
        return jax.lax.conv_general_dilated(
            x, w, (1, 1), ((pad, pad), (pad, pad)),
            dimension_numbers=('NCHW', 'OIHW', 'NCHW'),
            precision=jax.lax.Precision.HIGHEST)

    def bn(x, sb):
        s, b = sb
        return x * s[None, :, None, None] + b[None, :, None, None]

    g = jnp.mean(x, axis=(2, 3), keepdims=True)                 # gap
    g = bn(g, p['bn_in'])                                       # self.bn
    g = jax.nn.relu(bn(conv(g, p['w_gap'], 0), p['bn_gap']))    # gap_conv
    z = x + g                                                   # broadcast add
    return jax.nn.relu(bn(conv(z, p['w_out'], 1), p['bn_out'])) # out_conv


# ------------------------------------ main -------------------------------------

if __name__ == "__main__":
    key = jax.random.PRNGKey(0)
    kx, kparams = jax.random.split(key)
    x = jax.random.normal(kx, (BATCH, IN_DIM, HEIGHT, WIDTH), jnp.float32)  # NCHW

    p = init_params(kparams)
    kp = to_kernel_params(p)

    out = jax.jit(ceblock_pallas)(x, kp)
    out = jax.block_until_ready(out)

    ref = ceblock_ref(x, p)
    assert out.shape == ref.shape, (out.shape, ref.shape)
    # Tolerance covers possible MXU f32 multi-pass precision differences.
    if not bool(jnp.allclose(out, ref, rtol=2e-2, atol=2e-2)):
        raise AssertionError(
            "Pallas output mismatch, max abs err = "
            f"{float(jnp.max(jnp.abs(out - ref)))}")
    print("KERNEL_OK")
</pallas_src>

<mosaic_0001>
module attributes {stable_mosaic.version = 11 : i64} {
  func.func @_ceblock_kernel(%arg0: i32, %arg1: memref<1x16x16x4xf32, #tpu.memory_space<vmem>>, %arg2: memref<4x4xf32, #tpu.memory_space<vmem>>, %arg3: memref<4x36xf32, #tpu.memory_space<vmem>>, %arg4: memref<4x4xf32, #tpu.memory_space<vmem>>, %arg5: memref<4x2xf32, #tpu.memory_space<vmem>>, %arg6: memref<1x4x256xf32, #tpu.memory_space<vmem>>, %arg7: memref<18x18x4xf32, #tpu.memory_space<vmem>>) attributes {dimension_semantics = [#tpu.dimension_semantics<parallel>], iteration_bounds = array<i64: 2>, scalar_prefetch = 0 : i64, scratch_operands = 1 : i64, tpu.core_type = #tpu.core_type<tc>, window_params = [{transform_indices = @transform_0, window_bounds = array<i64: 1, 16, 16, 4>}, {pipeline_mode = #tpu.pipeline_mode<synchronous>, transform_indices = @transform_1, window_bounds = array<i64: 4, 4>}, {pipeline_mode = #tpu.pipeline_mode<synchronous>, transform_indices = @transform_2, window_bounds = array<i64: 4, 36>}, {pipeline_mode = #tpu.pipeline_mode<synchronous>, transform_indices = @transform_3, window_bounds = array<i64: 4, 4>}, {pipeline_mode = #tpu.pipeline_mode<synchronous>, transform_indices = @transform_4, window_bounds = array<i64: 4, 2>}, {transform_indices = @transform_5, window_bounds = array<i64: 1, 4, 256>}]} {
    %c0 = arith.constant 0 : index
    %c0_0 = arith.constant 0 : index
    %c0_1 = arith.constant 0 : index
    %c0_2 = arith.constant 0 : index
    %0 = vector.load %arg1[%c0, %c0_0, %c0_1, %c0_2] : memref<1x16x16x4xf32, #tpu.memory_space<vmem>>, vector<1x16x16x4xf32>
    %1 = vector.shape_cast %0 : vector<1x16x16x4xf32> to vector<16x16x4xf32>
    %cst = arith.constant dense<0.000000e+00> : vector<16x4xf32>
    %2 = vector.multi_reduction <add>, %1, %cst [0] : vector<16x16x4xf32> to vector<16x4xf32>
    %cst_3 = arith.constant dense<0.000000e+00> : vector<4xf32>
    %3 = vector.multi_reduction <add>, %2, %cst_3 [0] : vector<16x4xf32> to vector<4xf32>
    %4 = vector.shape_cast %3 : vector<4xf32> to vector<1x4xf32>
    %cst_4 = arith.constant 3.906250e-03 : f32
    %5 = vector.broadcast %cst_4 : f32 to vector<1x4xf32>
    %6 = arith.mulf %4, %5 : vector<1x4xf32>
    %c0_5 = arith.constant 0 : index
    %c0_6 = arith.constant 0 : index
    %7 = vector.load %arg4[%c0_5, %c0_6] : memref<4x4xf32, #tpu.memory_space<vmem>>, vector<4x4xf32>
    %8 = vector.extract_strided_slice %7 {offsets = [0, 0], sizes = [1, 4], strides = [1, 1]} : vector<4x4xf32> to vector<1x4xf32>
    %9 = arith.mulf %6, %8 : vector<1x4xf32>
    %10 = vector.extract_strided_slice %7 {offsets = [1, 0], sizes = [1, 4], strides = [1, 1]} : vector<4x4xf32> to vector<1x4xf32>
    %11 = arith.addf %9, %10 : vector<1x4xf32>
    %c0_7 = arith.constant 0 : index
    %c0_8 = arith.constant 0 : index
    %12 = vector.load %arg2[%c0_7, %c0_8] : memref<4x4xf32, #tpu.memory_space<vmem>>, vector<4x4xf32>
    %cst_9 = arith.constant dense<0.000000e+00> : vector<1x4xf32>
    %13 = tpu.matmul %11, %12, %cst_9 {dimension_numbers = #tpu.dot_dimension_numbers<[1], [0], [0], [1], [0, 0, 1, 1], [], []>, precision = #tpu.contract_precision<fp32>} : vector<1x4xf32>, vector<4x4xf32>, vector<1x4xf32> -> vector<1x4xf32>
    %14 = vector.extract_strided_slice %7 {offsets = [2, 0], sizes = [1, 4], strides = [1, 1]} : vector<4x4xf32> to vector<1x4xf32>
    %15 = arith.mulf %13, %14 : vector<1x4xf32>
    %16 = vector.extract_strided_slice %7 {offsets = [3, 0], sizes = [1, 4], strides = [1, 1]} : vector<4x4xf32> to vector<1x4xf32>
    %17 = arith.addf %15, %16 : vector<1x4xf32>
    %cst_10 = arith.constant 0.000000e+00 : f32
    %18 = vector.broadcast %cst_10 : f32 to vector<1x4xf32>
    %19 = arith.maximumf %17, %18 : vector<1x4xf32>
    %20 = vector.shape_cast %19 : vector<1x4xf32> to vector<1x1x4xf32>
    %21 = vector.broadcast %20 : vector<1x1x4xf32> to vector<16x16x4xf32>
    %22 = arith.addf %1, %21 : vector<16x16x4xf32>
    %cst_11 = arith.constant 0.000000e+00 : f32
    %23 = vector.broadcast %cst_11 : f32 to vector<18x18x4xf32>
    %c0_12 = arith.constant 0 : index
    %c0_13 = arith.constant 0 : index
    %c0_14 = arith.constant 0 : index
    %24 = vector.load %arg7[%c0_12, %c0_13, %c0_14] : memref<18x18x4xf32, #tpu.memory_space<vmem>>, vector<18x18x4xf32>
    tpu.vector_store %arg7[%c0_12, %c0_13, %c0_14], %23 {strides = array<i32>} : memref<18x18x4xf32, #tpu.memory_space<vmem>>, vector<18x18x4xf32>,
    %c1 = arith.constant 1 : index
    %c1_15 = arith.constant 1 : index
    %c0_16 = arith.constant 0 : index
    %25 = vector.load %arg7[%c1, %c1_15, %c0_16] : memref<18x18x4xf32, #tpu.memory_space<vmem>>, vector<16x16x4xf32>
    tpu.vector_store %arg7[%c1, %c1_15, %c0_16], %22 {strides = array<i32>} : memref<18x18x4xf32, #tpu.memory_space<vmem>>, vector<16x16x4xf32>,
    %c0_17 = arith.constant 0 : index
    %c0_18 = arith.constant 0 : index
    %c0_19 = arith.constant 0 : index
    %26 = vector.load %arg7[%c0_17, %c0_18, %c0_19] : memref<18x18x4xf32, #tpu.memory_space<vmem>>, vector<16x16x4xf32>
    %27 = vector.shape_cast %26 : vector<16x16x4xf32> to vector<256x4xf32>
    %c0_20 = arith.constant 0 : index
    %c1_21 = arith.constant 1 : index
    %c0_22 = arith.constant 0 : index
    %28 = vector.load %arg7[%c0_20, %c1_21, %c0_22] : memref<18x18x4xf32, #tpu.memory_space<vmem>>, vector<16x16x4xf32>
    %29 = vector.shape_cast %28 : vector<16x16x4xf32> to vector<256x4xf32>
    %c0_23 = arith.constant 0 : index
    %c2 = arith.constant 2 : index
    %c0_24 = arith.constant 0 : index
    %30 = vector.load %arg7[%c0_23, %c2, %c0_24] : memref<18x18x4xf32, #tpu.memory_space<vmem>>, vector<16x16x4xf32>
    %31 = vector.shape_cast %30 : vector<16x16x4xf32> to vector<256x4xf32>
    %c1_25 = arith.constant 1 : index
    %c0_26 = arith.constant 0 : index
    %c0_27 = arith.constant 0 : index
    %32 = vector.load %arg7[%c1_25, %c0_26, %c0_27] : memref<18x18x4xf32, #tpu.memory_space<vmem>>, vector<16x16x4xf32>
    %33 = vector.shape_cast %32 : vector<16x16x4xf32> to vector<256x4xf32>
    %c1_28 = arith.constant 1 : index
    %c1_29 = arith.constant 1 : index
    %c0_30 = arith.constant 0 : index
    %34 = vector.load %arg7[%c1_28, %c1_29, %c0_30] : memref<18x18x4xf32, #tpu.memory_space<vmem>>, vector<16x16x4xf32>
    %35 = vector.shape_cast %34 : vector<16x16x4xf32> to vector<256x4xf32>
    %c1_31 = arith.constant 1 : index
    %c2_32 = arith.constant 2 : index
    %c0_33 = arith.constant 0 : index
    %36 = vector.load %arg7[%c1_31, %c2_32, %c0_33] : memref<18x18x4xf32, #tpu.memory_space<vmem>>, vector<16x16x4xf32>
    %37 = vector.shape_cast %36 : vector<16x16x4xf32> to vector<256x4xf32>
    %c2_34 = arith.constant 2 : index
    %c0_35 = arith.constant 0 : index
    %c0_36 = arith.constant 0 : index
    %38 = vector.load %arg7[%c2_34, %c0_35, %c0_36] : memref<18x18x4xf32, #tpu.memory_space<vmem>>, vector<16x16x4xf32>
    %39 = vector.shape_cast %38 : vector<16x16x4xf32> to vector<256x4xf32>
    %c2_37 = arith.constant 2 : index
    %c1_38 = arith.constant 1 : index
    %c0_39 = arith.constant 0 : index
    %40 = vector.load %arg7[%c2_37, %c1_38, %c0_39] : memref<18x18x4xf32, #tpu.memory_space<vmem>>, vector<16x16x4xf32>
    %41 = vector.shape_cast %40 : vector<16x16x4xf32> to vector<256x4xf32>
    %c2_40 = arith.constant 2 : index
    %c2_41 = arith.constant 2 : index
    %c0_42 = arith.constant 0 : index
    %42 = vector.load %arg7[%c2_40, %c2_41, %c0_42] : memref<18x18x4xf32, #tpu.memory_space<vmem>>, vector<16x16x4xf32>
    %43 = vector.shape_cast %42 : vector<16x16x4xf32> to vector<256x4xf32>
    %44 = tpu.concatenate %27, %29, %31, %33, %35, %37, %39, %41, %43 in 1 : vector<256x4xf32>, vector<256x4xf32>, vector<256x4xf32>, vector<256x4xf32>, vector<256x4xf32>, vector<256x4xf32>, vector<256x4xf32>, vector<256x4xf32>, vector<256x4xf32> -> vector<256x36xf32>
    %c0_43 = arith.constant 0 : index
    %c0_44 = arith.constant 0 : index
    %45 = vector.load %arg3[%c0_43, %c0_44] : memref<4x36xf32, #tpu.memory_space<vmem>>, vector<4x36xf32>
    %cst_45 = arith.constant dense<0.000000e+00> : vector<4x256xf32>
    %46 = tpu.matmul %45, %44, %cst_45 {dimension_numbers = #tpu.dot_dimension_numbers<[1], [1], [0], [0], [0, 0, 1, 0], [], []>, precision = #tpu.contract_precision<fp32>} : vector<4x36xf32>, vector<256x36xf32>, vector<4x256xf32> -> vector<4x256xf32>
    %c0_46 = arith.constant 0 : index
    %c0_47 = arith.constant 0 : index
    %47 = vector.load %arg5[%c0_46, %c0_47] : memref<4x2xf32, #tpu.memory_space<vmem>>, vector<4x2xf32>
    %48 = vector.extract_strided_slice %47 {offsets = [0, 0], sizes = [4, 1], strides = [1, 1]} : vector<4x2xf32> to vector<4x1xf32>
    %49 = vector.broadcast %48 : vector<4x1xf32> to vector<4x256xf32>
    %50 = arith.mulf %46, %49 : vector<4x256xf32>
    %51 = vector.extract_strided_slice %47 {offsets = [0, 1], sizes = [4, 1], strides = [1, 1]} : vector<4x2xf32> to vector<4x1xf32>
    %52 = vector.broadcast %51 : vector<4x1xf32> to vector<4x256xf32>
    %53 = arith.addf %50, %52 : vector<4x256xf32>
    %cst_48 = arith.constant 0.000000e+00 : f32
    %54 = vector.broadcast %cst_48 : f32 to vector<4x256xf32>
    %55 = arith.maximumf %53, %54 : vector<4x256xf32>
    %c0_49 = arith.constant 0 : index
    %c0_50 = arith.constant 0 : index
    %c0_51 = arith.constant 0 : index
    %56 = vector.load %arg6[%c0_49, %c0_50, %c0_51] : memref<1x4x256xf32, #tpu.memory_space<vmem>>, vector<1x4x256xf32>
    %57 = vector.shape_cast %56 : vector<1x4x256xf32> to vector<4x256xf32>
    %58 = vector.shape_cast %55 : vector<4x256xf32> to vector<1x4x256xf32>
    tpu.vector_store %arg6[%c0_49, %c0_50, %c0_51], %58 {strides = array<i32>} : memref<1x4x256xf32, #tpu.memory_space<vmem>>, vector<1x4x256xf32>,
    return
  }
  func.func @transform_0(%arg0: i32) -> (i32, i32, i32, i32) {
    %c0_i32 = arith.constant 0 : i32
    %c0_i32_0 = arith.constant 0 : i32
    %c0_i32_1 = arith.constant 0 : i32
    %c0_i32_2 = arith.constant 0 : i32
    return %arg0, %c0_i32, %c0_i32_0, %c0_i32_1 : i32, i32, i32, i32
  }
  func.func @transform_1(%arg0: i32) -> (i32, i32) {
    %c0_i32 = arith.constant 0 : i32
    %c0_i32_0 = arith.constant 0 : i32
    %c0_i32_1 = arith.constant 0 : i32
    return %c0_i32, %c0_i32_0 : i32, i32
  }
  func.func @transform_2(%arg0: i32) -> (i32, i32) {
    %c0_i32 = arith.constant 0 : i32
    %c0_i32_0 = arith.constant 0 : i32
    %c0_i32_1 = arith.constant 0 : i32
    return %c0_i32, %c0_i32_0 : i32, i32
  }
  func.func @transform_3(%arg0: i32) -> (i32, i32) {
    %c0_i32 = arith.constant 0 : i32
    %c0_i32_0 = arith.constant 0 : i32
    %c0_i32_1 = arith.constant 0 : i32
    return %c0_i32, %c0_i32_0 : i32, i32
  }
  func.func @transform_4(%arg0: i32) -> (i32, i32) {
    %c0_i32 = arith.constant 0 : i32
    %c0_i32_0 = arith.constant 0 : i32
    %c0_i32_1 = arith.constant 0 : i32
    return %c0_i32, %c0_i32_0 : i32, i32
  }
  func.func @transform_5(%arg0: i32) -> (i32, i32, i32) {
    %c0_i32 = arith.constant 0 : i32
    %c0_i32_0 = arith.constant 0 : i32
    %c0_i32_1 = arith.constant 0 : i32
    return %arg0, %c0_i32, %c0_i32_0 : i32, i32, i32
  }
}

</mosaic_0001>

<bundles_post_ra>
// kernel: ceblock_pallas.1
= control target key start
LH: loop header
LB: loop body
LE: loop exit
PB: predicated region body
PF: predicated region fallthrough
CT: control target
= control target key end

     0   :  { %s4089_s18 = smov 0   ;;  %s6093_s0 = inlined_call_operand.vmem [shape: f32[2,16,16,4], index: 0, kind: input, shape index: {}]   ;;  %s6094_s1 = inlined_call_operand.vmem [shape: f32[4,4], index: 1, kind: input, shape index: {}]   ;;  %s6095_s2 = inlined_call_operand.vmem [shape: f32[4,36], index: 2, kind: input, shape index: {}]   ;;  %s6096_s3 = inlined_call_operand.vmem [shape: f32[4,4], index: 3, kind: input, shape index: {}]   ;;  %s6097_s4 = inlined_call_operand.vmem [shape: f32[4,2], index: 4, kind: input, shape index: {}]   ;;  %s6098_s5 = inlined_call_operand.vmem [shape: f32[2,4,256], index: 5, kind: output, shape index: {}]  }
   0x1 LB: > { %s3529_s19 = sadd.s32 4294967295, %s4045_s18   ;;  %p3533_p0 = scmp.ge.s32.totalorder %s4045_s18, 1  ;;  %s4045_s18 = sphi %s4089_s18, %s15_s18  }
   0x2   : > { %p187_p1 = scmp.lt.s32.totalorder %s4045_s18, 3 }
   0x4   : > { %p188_p2 = pnand %p3533_p0, %p187_p1 }
   0x6   : > { %191 = sbr.rel (%p188_p2) target bundleno = 1323 (0x52b), region = 40 }
   0xd   : > { %v336_v0 = vld [vmem:[%s6094_s1] sm:$0xf]  ;;  %vm340_vm0 = vcmask 1043456   ;;  %p215_p3 = scmp.lt.s32.totalorder %s3529_s19, 1  ;;  %v4047_v1 = vmov 0.0   ;;  %vm4048_vm1 = vmmov 0  }
   0xe   : > { %3773 = vmatprep.subr.mxu0 %v4047_v1  ;;  %v4101_v2 = vsel %vm340_vm0, %v336_v0, 0  ;;  %3775 = vmatprep.mubr.msk.f32.mxu0 %vm4048_vm1, %v4047_v1  ;;  %vm257_vm2 = vcmask 31744   ;;  %vm835_vm3 = vcmask 25600   ;;  %s4049_s28 = smov 4   ;;  %s4050_s29 = smov 8   ;;  %vm2299_vm4 = vcmask 97280  }
   0xf   : > { %v4106_v3 = vand.u32 4294901760, %v4101_v2  ;;  %s6262_s19 = smov (!%p215_p3, %s3529_s19), 1  ;;  %833 = vst.msk [vmem:[#allocation2] sm:$0xff] %vm257_vm2, %v4047_v1  ;;  %834 = vst.msk [vmem:[#allocation2 + $0x8] sm:$0xff] %vm257_vm2, %v4047_v1  ;;  %3758 = vmatprep.subr.mxu1 %v4047_v1  ;;  %3760 = vmatprep.mubr.msk.f32.mxu1 %vm4048_vm1, %v4047_v1  ;;  %s4051_s30 = smov 12   ;;  %vm2266_vm5 = vcmask 64512  }
  0x10   : > { %837 = vst.msk [vmem:[#allocation2 + $0x18] sm:$0xff] %vm257_vm2, %v4047_v1  ;;  %838 = vst.msk [vmem:[#allocation2 + $0x20] sm:$0xff] %vm257_vm2, %v4047_v1  ;;  %s3540_s22 = sshll.u32 %s6262_s19, 8  ;;  %s4052_s6 = smov 16   ;;  %vm2332_vm6 = vcmask 130048   ;;  %vm2365_vm7 = vcmask 162816  }
  0x11   : > { %840 = vst.msk [vmem:[#allocation2 + $0x30] sm:$0xff] %vm257_vm2, %v4047_v1  ;;  %841 = vst.msk [vmem:[#allocation2 + $0x38] sm:$0xff] %vm257_vm2, %v4047_v1  ;;  %3774 = vmatpush3.msra.mxu0 %v4106_v3  ;;  %3759 = vmatpush3.msra.mxu1 %v4106_v3  ;;  %s4191_s25 = scalar_lea.vmem %s6093_s0, %s3540_s22  ;;  %s4053_s7 = smov 20   ;;  %vm2398_vm8 = vcmask 195584   ;;  %vm2431_vm9 = vcmask 228352   ;;  %vm2464_vm10 = vcmask 261120  }
  0x12   : > { %843 = vst.msk [vmem:[#allocation2 + $0x48] sm:$0xff] %vm257_vm2, %v4047_v1  ;;  %844 = vst.msk [vmem:[#allocation2 + $0x50] sm:$0xff] %vm257_vm2, %v4047_v1  ;;  %3763 = vmatprep.subr.mxu1 %v4047_v1  ;;  %3778 = vmatprep.subr.mxu0 %v4047_v1  ;;  %v4196_v4 = vld [vmem:[%s4191_s25] sm:$0xff]  ;;  %v4199_v5 = vld [vmem:[%s4191_s25 + $0x8] sm:$0xff]  ;;  %s4054_s8 = smov 24   ;;  %s4055_s9 = smov 28  }
  0x13   : > { %846 = vst.msk [vmem:[#allocation2 + $0x60] sm:$0xff] %vm257_vm2, %v4047_v1  ;;  %847 = vst.msk [vmem:[#allocation2 + $0x68] sm:$0xff] %vm257_vm2, %v4047_v1  ;;  %v4202_v6 = vld [vmem:[%s4191_s25 + $0x10] sm:$0xff]  ;;  %v4205_v7 = vld [vmem:[%s4191_s25 + $0x18] sm:$0xff]  ;;  %v258_v10 = vsel %vm257_vm2, %v4196_v4, 0.0  ;;  %v289_v12 = vsel %vm257_vm2, %v4199_v5, 0.0 }
  0x14   : > { %849 = vst.msk [vmem:[#allocation2 + $0x78] sm:$0xff] %vm257_vm2, %v4047_v1  ;;  %850 = vst.msk [vmem:[#allocation2 + $0x80] sm:$0xff] %vm257_vm2, %v4047_v1  ;;  %v4208_v8 = vld [vmem:[%s4191_s25 + $0x20] sm:$0xff]  ;;  %v4211_v9 = vld [vmem:[%s4191_s25 + $0x28] sm:$0xff]  ;;  %v259_v11 = vsel %vm257_vm2, %v4202_v6, 0.0  ;;  %v290_v18 = vsel %vm257_vm2, %v4205_v7, 0.0 }
  0x15   : > { %852 = vst.msk [vmem:[#allocation2 + $0x90] sm:$0xff] %vm257_vm2, %v4047_v1  ;;  %853 = vst.msk [vmem:[#allocation2 + $0x98] sm:$0xff] %vm257_vm2, %v4047_v1  ;;  %v4220_v13 = vld [vmem:[%s4191_s25 + $0x30] sm:$0xff]  ;;  %v4223_v14 = vld [vmem:[%s4191_s25 + $0x38] sm:$0xff]  ;;  %v260_v16 = vadd.f32 %v259_v11, %v258_v10  ;;  %v261_v17 = vsel %vm257_vm2, %v4208_v8, 0.0  ;;  %v292_v19 = vsel %vm257_vm2, %v4211_v9, 0.0  ;;  %v291_v22 = vadd.f32 %v290_v18, %v289_v12 }
  0x16   : > { %855 = vst.msk [vmem:[#allocation2 + $0xa8] sm:$0xff] %vm257_vm2, %v4047_v1  ;;  %856 = vst.msk [vmem:[#allocation2 + $0xb0] sm:$0xff] %vm257_vm2, %v4047_v1  ;;  %v4226_v15 = vld [vmem:[%s4191_s25 + $0x40] sm:$0xff]  ;;  %v4235_v20 = vld [vmem:[%s4191_s25 + $0x48] sm:$0xff]  ;;  %v263_v21 = vsel %vm257_vm2, %v4220_v13, 0.0  ;;  %v294_v25 = vsel %vm257_vm2, %v4223_v14, 0.0 }
  0x17   : > { %858 = vst.msk [vmem:[#allocation2 + $0xc0] sm:$0xff] %vm257_vm2, %v4047_v1  ;;  %859 = vst.msk [vmem:[#allocation2 + $0xc8] sm:$0xff] %vm257_vm2, %v4047_v1  ;;  %v4240_v23 = vld [vmem:[%s4191_s25 + $0x50] sm:$0xff]  ;;  %v262_v24 = vadd.f32 %v261_v17, %v260_v16  ;;  %v4245_v26 = vld [vmem:[%s4191_s25 + $0x58] sm:$0xff]  ;;  %v265_v27 = vsel %vm257_vm2, %v4226_v15, 0.0  ;;  %v293_v28 = vadd.f32 %v292_v19, %v291_v22  ;;  %v296_v31 = vsel %vm257_vm2, %v4235_v20, 0.0 }
  0x18   : > { %861 = vst.msk [vmem:[#allocation2 + $0xd8] sm:$0xff] %vm257_vm2, %v4047_v1  ;;  %862 = vst.msk [vmem:[#allocation2 + $0xe0] sm:$0xff] %vm257_vm2, %v4047_v1  ;;  %v4250_v29 = vld [vmem:[%s4191_s25 + $0x60] sm:$0xff]  ;;  %v4255_v32 = vld [vmem:[%s4191_s25 + $0x68] sm:$0xff]  ;;  %v267_v33 = vsel %vm257_vm2, %v4240_v23, 0.0  ;;  %v298_v37 = vsel %vm257_vm2, %v4245_v26, 0.0 }
  0x19   : > { %864 = vst.msk [vmem:[#allocation2 + $0xf0] sm:$0xff] %vm257_vm2, %v4047_v1  ;;  %865 = vst.msk [vmem:[#allocation2 + $0xf8] sm:$0xff] %vm257_vm2, %v4047_v1  ;;  %v264_v30 = vadd.f32 %v263_v21, %v262_v24  ;;  %v295_v34 = vadd.f32 %v294_v25, %v293_v28  ;;  %v4260_v35 = vld [vmem:[%s4191_s25 + $0x70] sm:$0xff]  ;;  %v4265_v38 = vld [vmem:[%s4191_s25 + $0x78] sm:$0xff]  ;;  %v269_v39 = vsel %vm257_vm2, %v4250_v29, 0.0  ;;  %v300_v43 = vsel %vm257_vm2, %v4255_v32, 0.0 }
  0x1a   : > { %867 = vst.msk [vmem:[#allocation2 + $0x108] sm:$0xff] %vm257_vm2, %v4047_v1  ;;  %868 = vst.msk [vmem:[#allocation2 + $0x110] sm:$0xff] %vm257_vm2, %v4047_v1  ;;  %v4270_v41 = vld [vmem:[%s4191_s25 + $0x80] sm:$0xff]  ;;  %v4275_v44 = vld [vmem:[%s4191_s25 + $0x88] sm:$0xff]  ;;  %v271_v45 = vsel %vm257_vm2, %v4260_v35, 0.0  ;;  %v302_v49 = vsel %vm257_vm2, %v4265_v38, 0.0 }
  0x1b   : > { %870 = vst.msk [vmem:[#allocation2 + $0x120] sm:$0xff] %vm257_vm2, %v4047_v1  ;;  %871 = vst.msk [vmem:[#allocation2 + $0x128] sm:$0xff] %vm257_vm2, %v4047_v1  ;;  %v266_v36 = vadd.f32 %v265_v27, %v264_v30  ;;  %v297_v40 = vadd.f32 %v296_v31, %v295_v34  ;;  %v4280_v47 = vld [vmem:[%s4191_s25 + $0x90] sm:$0xff]  ;;  %v4285_v50 = vld [vmem:[%s4191_s25 + $0x98] sm:$0xff]  ;;  %v273_v51 = vsel %vm257_vm2, %v4270_v41, 0.0  ;;  %v304_v55 = vsel %vm257_vm2, %v4275_v44, 0.0 }
  0x1c   : > { %873 = vst.msk [vmem:[#allocation2 + $0x138] sm:$0xff] %vm257_vm2, %v4047_v1  ;;  %874 = vst.msk [vmem:[#allocation2 + $0x140] sm:$0xff] %vm257_vm2, %v4047_v1  ;;  %v4290_v53 = vld [vmem:[%s4191_s25 + $0xa0] sm:$0xff]  ;;  %v4295_v56 = vld [vmem:[%s4191_s25 + $0xa8] sm:$0xff]  ;;  %v275_v57 = vsel %vm257_vm2, %v4280_v47, 0.0  ;;  %v306_v61 = vsel %vm257_vm2, %v4285_v50, 0.0 }
  0x1d   : > { %876 = vst.msk [vmem:[#allocation2 + $0x150] sm:$0xff] %vm257_vm2, %v4047_v1  ;;  %877 = vst.msk [vmem:[#allocation2 + $0x158] sm:$0xff] %vm257_vm2, %v4047_v1  ;;  %v268_v42 = vadd.f32 %v267_v33, %v266_v36  ;;  %v299_v46 = vadd.f32 %v298_v37, %v297_v40  ;;  %v4300_v59 = vld [vmem:[%s4191_s25 + $0xb0] sm:$0xff]  ;;  %v4305_v62 = vld [vmem:[%s4191_s25 + $0xb8] sm:$0xff]  ;;  %v277_v63 = vsel %vm257_vm2, %v4290_v53, 0.0  ;;  %v308_v12 = vsel %vm257_vm2, %v4295_v56, 0.0 }
  0x1e   : > { %879 = vst.msk [vmem:[#allocation2 + $0x168] sm:$0xff] %vm257_vm2, %v4047_v1  ;;  %880 = vst.msk [vmem:[#allocation2 + $0x170] sm:$0xff] %vm257_vm2, %v4047_v1  ;;  %v4310_v10 = vld [vmem:[%s4191_s25 + $0xc0] sm:$0xff]  ;;  %v4315_v16 = vld [vmem:[%s4191_s25 + $0xc8] sm:$0xff]  ;;  %v279_v17 = vsel %vm257_vm2, %v4300_v59, 0.0  ;;  %v310_v22 = vsel %vm257_vm2, %v4305_v62, 0.0 }
  0x1f   : > { %882 = vst.msk [vmem:[#allocation2 + $0x180] sm:$0xff] %vm257_vm2, %v4047_v1  ;;  %883 = vst.msk [vmem:[#allocation2 + $0x188] sm:$0xff] %vm257_vm2, %v4047_v1  ;;  %v270_v48 = vadd.f32 %v269_v39, %v268_v42  ;;  %v301_v52 = vadd.f32 %v300_v43, %v299_v46  ;;  %v4320_v19 = vld [vmem:[%s4191_s25 + $0xd0] sm:$0xff]  ;;  %v4325_v24 = vld [vmem:[%s4191_s25 + $0xd8] sm:$0xff]  ;;  %v281_v25 = vsel %vm257_vm2, %v4310_v10, 0.0  ;;  %v312_v31 = vsel %vm257_vm2, %v4315_v16, 0.0 }
  0x20   : > { %885 = vst.msk [vmem:[#allocation2 + $0x198] sm:$0xff] %vm257_vm2, %v4047_v1  ;;  %886 = vst.msk [vmem:[#allocation2 + $0x1a0] sm:$0xff] %vm257_vm2, %v4047_v1  ;;  %v4330_v28 = vld [vmem:[%s4191_s25 + $0xe0] sm:$0xff]  ;;  %v4335_v33 = vld [vmem:[%s4191_s25 + $0xe8] sm:$0xff]  ;;  %v283_v34 = vsel %vm257_vm2, %v4320_v19, 0.0  ;;  %v314_v40 = vsel %vm257_vm2, %v4325_v24, 0.0 }
  0x21   : > { %v272_v54 = vadd.f32 %v271_v45, %v270_v48  ;;  %v303_v58 = vadd.f32 %v302_v49, %v301_v52  ;;  %v4340_v37 = vld [vmem:[%s4191_s25 + $0xf0] sm:$0xff]  ;;  %v4345_v42 = vld [vmem:[%s4191_s25 + $0xf8] sm:$0xff]  ;;  %v285_v43 = vsel %vm257_vm2, %v4330_v28, 0.0  ;;  %v316_v48 = vsel %vm257_vm2, %v4335_v33, 0.0  ;;  %836 = vst.msk [vmem:[#allocation2 + $0x10] sm:$0x3] %vm835_vm3, %v4047_v1 }
  0x22   : > { %v287_v49 = vsel %vm257_vm2, %v4340_v37, 0.0  ;;  %839 = vst.msk [vmem:[#allocation2 + $0x28] sm:$0x3] %vm835_vm3, %v4047_v1  ;;  %842 = vst.msk [vmem:[#allocation2 + $0x40] sm:$0x3] %vm835_vm3, %v4047_v1  ;;  %s4056_s10 = smov 32  }
  0x23   : > { %v274_v60 = vadd.f32 %v273_v51, %v272_v54  ;;  %v305_v0 = vadd.f32 %v304_v55, %v303_v58  ;;  %v318_v54 = vsel %vm257_vm2, %v4345_v42, 0.0  ;;  %845 = vst.msk [vmem:[#allocation2 + $0x58] sm:$0x3] %vm835_vm3, %v4047_v1  ;;  %848 = vst.msk [vmem:[#allocation2 + $0x70] sm:$0x3] %vm835_vm3, %v4047_v1  ;;  %vm2498_vm11 = vcmask 293888  }
  0x24   : > { %851 = vst.msk [vmem:[#allocation2 + $0x88] sm:$0x3] %vm835_vm3, %v4047_v1  ;;  %854 = vst.msk [vmem:[#allocation2 + $0xa0] sm:$0x3] %vm835_vm3, %v4047_v1  ;;  %s3541_s15 = sshll.u32 %s6262_s19, 3 }
  0x25   : > { %v276_v11 = vadd.f32 %v275_v57, %v274_v60  ;;  %v307_v18 = vadd.f32 %v306_v61, %v305_v0  ;;  %857 = vst.msk [vmem:[#allocation2 + $0xb8] sm:$0x3] %vm835_vm3, %v4047_v1  ;;  %860 = vst.msk [vmem:[#allocation2 + $0xd0] sm:$0x3] %vm835_vm3, %v4047_v1  ;;  %s224_s20 = scalar_lea.vmem %s6098_s5, %s3541_s15 }
  0x26   : > { %863 = vst.msk [vmem:[#allocation2 + $0xe8] sm:$0x3] %vm835_vm3, %v4047_v1  ;;  %866 = vst.msk [vmem:[#allocation2 + $0x100] sm:$0x3] %vm835_vm3, %v4047_v1 }
  0x27   : > { %v278_v21 = vadd.f32 %v277_v63, %v276_v11  ;;  %v309_v27 = vadd.f32 %v308_v12, %v307_v18  ;;  %869 = vst.msk [vmem:[#allocation2 + $0x118] sm:$0x3] %vm835_vm3, %v4047_v1  ;;  %872 = vst.msk [vmem:[#allocation2 + $0x130] sm:$0x3] %vm835_vm3, %v4047_v1 }
  0x28   : > { %875 = vst.msk [vmem:[#allocation2 + $0x148] sm:$0x3] %vm835_vm3, %v4047_v1  ;;  %878 = vst.msk [vmem:[#allocation2 + $0x160] sm:$0x3] %vm835_vm3, %v4047_v1 }
  0x29   : > { %v280_v30 = vadd.f32 %v279_v17, %v278_v21  ;;  %v311_v36 = vadd.f32 %v310_v22, %v309_v27  ;;  %v4360_v21 = vld [vmem:[%s6096_s3] sm:$0xf]  ;;  %881 = vst.msk [vmem:[#allocation2 + $0x178] sm:$0x3] %vm835_vm3, %v4047_v1  ;;  %884 = vst.msk [vmem:[#allocation2 + $0x190] sm:$0x3] %vm835_vm3, %v4047_v1 }
  0x2a   : > { %v333_v27 = vrot.slane %v4360_v21, 1  ;;  %887 = vst.msk [vmem:[#allocation2 + $0x1a8] sm:$0x3] %vm835_vm3, %v4047_v1 }
  0x2b   : > { %v282_v39 = vadd.f32 %v281_v25, %v280_v30  ;;  %v313_v45 = vadd.f32 %v312_v31, %v311_v36  ;;  %v422_v30 = vsub.f32 %v4101_v2, %v4106_v3  ;;  %v953_v2 = vld [vmem:[#allocation2 + $0x1] sm:$0xff] }
  0x2c   : > { %1242 = vrot.lane.b32.xlu0 %v953_v2, %s4049_s28 }
  0x2d   : > { %v284_v46 = vadd.f32 %v283_v34, %v282_v39  ;;  %v315_v51 = vadd.f32 %v314_v40, %v313_v45  ;;  %v423_v39 = vand.u32 4294901760, %v422_v30 }
  0x2f   : > { %v286_v52 = vadd.f32 %v285_v43, %v284_v46  ;;  %v317_v55 = vadd.f32 %v316_v48, %v315_v51  ;;  %v424_v45 = vsub.f32 %v422_v30, %v423_v39 }
  0x31   : > { %v288_v57 = vadd.f32 %v287_v49, %v286_v52  ;;  %v319_v58 = vadd.f32 %v318_v54, %v317_v55  ;;  %v425_v49 = vand.u32 4294901760, %v424_v45  ;;  %v986_v52 = vld [vmem:[#allocation2 + $0xa] sm:$0xff]  ;;  %v985_v54 = vld [vmem:[#allocation2 + $0x2] sm:$0xff] }
  0x32   : > { %1372 = vrot.lane.b32.xlu1 %v986_v52, %s4050_s29 }
  0x33   : > { %v320_v60 = vsel %vm257_vm2, %v288_v57, 0.0  ;;  %v321_v61 = vsel %vm257_vm2, %v319_v58, 0.0  ;;  %v797_v58 = vlaneseq }
  0x34   : > { %v322_v63 = vadd.f32 %v321_v61, %v320_v60  ;;  %v790_v60 = vrot.slane %v4360_v21, 2 }
  0x36   : > { %v323_v0 = vrot.slane %v322_v63, 4 }
  0x38   : > { %v324_v11 = vadd.f32 %v323_v0, %v322_v63  ;;  %v793_v63 = vrot.slane %v4360_v21, 3  ;;  %v798_v0 = vshrl.u32 %v797_v58, 7 }
  0x3a   : > { %v325_v12 = vrot.slane %v324_v11, 2 }
  0x3c   : > { %v326_v17 = vadd.f32 %v325_v12, %v324_v11 }
  0x3e   : > { %v327_v18 = vrot.slane %v326_v17, 1 }
  0x40   : > { %v328_v22 = vadd.f32 %v327_v18, %v326_v17  ;;  %v799_v18 = vsub.s32 0, %v798_v0 }
  0x42   : > { %v329_v25 = vmul.f32 0.00390625, %v328_v22 }
  0x44   : > { %v331_v31 = vmul.f32 %v4360_v21, %v329_v25 }
  0x46   : > { %v335_v34 = vadd.f32 %v333_v27, %v331_v31 }
  0x48   : > { %v338_v36 = vsel %vm257_vm2, %v335_v34, 0 }
  0x49   : > { %v410_v40 = vand.u32 4294901760, %v338_v36 }
  0x4b   : > { %v411_v43 = vsub.f32 %v338_v36, %v410_v40 }
  0x4d   : > { %v412_v46 = vand.u32 4294901760, %v411_v43 }
  0x4f   : > { %3776 = vmatmul.mubr.f32.vlgmr.msra.gmra.mrb[0].mxu0 %v412_v46  ;;  %v413_v48 = vsub.f32 %v411_v43, %v412_v46 }
  0x50   : > { %3779 = vmatpush3.msra.mxu0 %v423_v39  ;;  %3780 = vmatprep.mubr.msk.f32.mxu0 %vm4048_vm1, %v4047_v1 }
  0x51   : > { %v414_v51 = vand.u32 4294901760, %v413_v48  ;;  %3783 = vmatprep.subr.mxu0 %v4047_v1 }
  0x53   : > { %3761 = vmatmul.mubr.f32.vlgmr.msra.gmra.mrb[0].mxu1 %v414_v51 }
  0x54   : > { %3764 = vmatpush3.msra.mxu1 %v425_v49  ;;  %3765 = vmatprep.mubr.msk.f32.mxu1 %vm4048_vm1, %v4047_v1 }
  0x55   : > { %3768 = vmatprep.subr.mxu1 %v4047_v1 }
  0x57   : > { %3781 = vmatmul.mubr.f32.vlgmr.msra.gmra.mrb[0].mxu0 %v410_v40 }
  0x58   : > { %3784 = vmatpush3.msra.mxu0 %v4106_v3  ;;  %3785 = vmatprep.mubr.msk.f32.mxu0 %vm4048_vm1, %v4047_v1  ;;  %v954_v3 = vld [vmem:[#allocation2 + $0x9] sm:$0xff] }
  0x59   : > { %1244 = vrot.lane.b32.xlu0 %v954_v3, %s4049_s28 }
  0x5b   : > { %3766 = vmatmul.mubr.f32.vlgmr.msra.gmra.mrb[0].mxu1 %v410_v40 }
  0x5c   : > { %3769 = vmatpush3.msra.mxu1 %v422_v30  ;;  %3770 = vmatprep.mubr.msk.f32.mxu1 %vm4048_vm1, %v4047_v1 }
  0x5d   : > { %1370 = vrot.lane.b32.xlu0 %v985_v54, %s4050_s29 }
  0x5f   : > { %3786 = vmatmul.mubr.f32.vlgmr.msra.gmra.mrb[0].mxu0 %v410_v40 }
  0x63   : > { %3771 = vmatmul.mubr.f32.vlgmr.msra.gmra.mrb[0].mxu1 %v411_v43 }
 0x132   : > { %v786_v55 = vpop.f32.mrb[0].mxu0 }
 0x133   : > { %v3787_v57 = vpop.f32.mrb[1].mxu0 }
 0x136   : > { %v566_v1 = vpop.f32.mrb[0].mxu1 }
 0x137   : > { %v3980_v61 = vadd.f32 %v786_v55, %v566_v1  ;;  %v3772_v11 = vpop.f32.mrb[1].mxu1 }
 0x139   : > { %v792_v12 = vmul.f32 %v3980_v61, %v790_v60 }
 0x13b   : > { %v795_v17 = vadd.f32 %v793_v63, %v792_v12 }
 0x13d   : > { %v796_v22 = vmax.f32 %v795_v17, 0.0 }
 0x13f   : > { %v800_v25 = vrot.slane %v796_v22, %v799_v18 }
 0x141   : > { %v819_v27 = vadd.f32 %v800_v25, %v4280_v47  ;;  %v820_v30 = vadd.f32 %v800_v25, %v4285_v50  ;;  %v821_v31 = vadd.f32 %v800_v25, %v4290_v53  ;;  %v822_v34 = vadd.f32 %v800_v25, %v4295_v56 }
 0x142   : > { %v823_v36 = vadd.f32 %v800_v25, %v4300_v59  ;;  %v824_v39 = vadd.f32 %v800_v25, %v4305_v62  ;;  %v825_v21 = vadd.f32 %v800_v25, %v4310_v10  ;;  %v826_v40 = vadd.f32 %v800_v25, %v4315_v16 }
 0x143   : > { %v827_v43 = vadd.f32 %v800_v25, %v4320_v19  ;;  %v828_v45 = vadd.f32 %v800_v25, %v4325_v24  ;;  %v829_v47 = vadd.f32 %v800_v25, %v4330_v28  ;;  %v830_v50 = vadd.f32 %v800_v25, %v4335_v33  ;;  %907 = vst.msk [vmem:[#allocation2 + $0xf1] sm:$0xff] %vm257_vm2, %v819_v27 }
 0x144   : > { %909 = vst.msk [vmem:[#allocation2 + $0x109] sm:$0xff] %vm257_vm2, %v821_v31  ;;  %908 = vst.msk [vmem:[#allocation2 + $0xf9] sm:$0xff] %vm257_vm2, %v820_v30  ;;  %v831_v53 = vadd.f32 %v800_v25, %v4340_v37  ;;  %v832_v56 = vadd.f32 %v800_v25, %v4345_v42  ;;  %v803_v59 = vadd.f32 %v800_v25, %v4202_v6 }
 0x145   : > { %910 = vst.msk [vmem:[#allocation2 + $0x111] sm:$0xff] %vm257_vm2, %v822_v34  ;;  %911 = vst.msk [vmem:[#allocation2 + $0x121] sm:$0xff] %vm257_vm2, %v823_v36  ;;  %v801_v62 = vadd.f32 %v800_v25, %v4196_v4  ;;  %v805_v10 = vadd.f32 %v800_v25, %v4208_v8  ;;  %v802_v16 = vadd.f32 %v800_v25, %v4199_v5 }
 0x146   : > { %913 = vst.msk [vmem:[#allocation2 + $0x139] sm:$0xff] %vm257_vm2, %v825_v21  ;;  %912 = vst.msk [vmem:[#allocation2 + $0x129] sm:$0xff] %vm257_vm2, %v824_v39  ;;  %v807_v19 = vadd.f32 %v800_v25, %v4220_v13  ;;  %v804_v24 = vadd.f32 %v800_v25, %v4205_v7  ;;  %v809_v4 = vadd.f32 %v800_v25, %v4226_v15  ;;  %v4604_v21 = vpop.permute.xlu0 %1242 }
 0x147   : > { %914 = vst.msk [vmem:[#allocation2 + $0x141] sm:$0xff] %vm257_vm2, %v826_v40  ;;  %915 = vst.msk [vmem:[#allocation2 + $0x151] sm:$0xff] %vm257_vm2, %v827_v43  ;;  %v806_v6 = vadd.f32 %v800_v25, %v4211_v9  ;;  %v811_v8 = vadd.f32 %v800_v25, %v4240_v23  ;;  %v808_v5 = vadd.f32 %v800_v25, %v4223_v14  ;;  %v4620_v43 = vpop.permute.xlu1 %1372 }
 0x148   : > { %917 = vst.msk [vmem:[#allocation2 + $0x169] sm:$0xff] %vm257_vm2, %v829_v47  ;;  %916 = vst.msk [vmem:[#allocation2 + $0x159] sm:$0xff] %vm257_vm2, %v828_v45  ;;  %v813_v7 = vadd.f32 %v800_v25, %v4250_v29  ;;  %v810_v13 = vadd.f32 %v800_v25, %v4235_v20  ;;  %v815_v15 = vadd.f32 %v800_v25, %v4260_v35 }
 0x149   : > { %918 = vst.msk [vmem:[#allocation2 + $0x171] sm:$0xff] %vm257_vm2, %v830_v50  ;;  %919 = vst.msk [vmem:[#allocation2 + $0x181] sm:$0xff] %vm257_vm2, %v831_v53  ;;  %v812_v9 = vadd.f32 %v800_v25, %v4245_v26  ;;  %v816_v14 = vadd.f32 %v800_v25, %v4265_v38  ;;  %v814_v23 = vadd.f32 %v800_v25, %v4255_v32 }
 0x14a   : > { %920 = vst.msk [vmem:[#allocation2 + $0x189] sm:$0xff] %vm257_vm2, %v832_v56  ;;  %891 = vst.msk [vmem:[#allocation2 + $0x31] sm:$0xff] %vm257_vm2, %v803_v59  ;;  %v817_v29 = vadd.f32 %v800_v25, %v4270_v41  ;;  %v818_v20 = vadd.f32 %v800_v25, %v4275_v44  ;;  %v4548_v11 = vld [vmem:[#allocation2 + $0xf0] sm:$0xff]  ;;  %v4610_v40 = vpop.permute.xlu0 %1244 }
 0x14b   : > { %889 = vst.msk [vmem:[#allocation2 + $0x19] sm:$0xff] %vm257_vm2, %v801_v62  ;;  %893 = vst.msk [vmem:[#allocation2 + $0x49] sm:$0xff] %vm257_vm2, %v805_v10  ;;  %v4558_v22 = vld [vmem:[#allocation2 + $0xf1] sm:$0xff]  ;;  %v4574_v31 = vld [vmem:[#allocation2 + $0xf9] sm:$0xff] }
 0x14c   : > { %890 = vst.msk [vmem:[#allocation2 + $0x21] sm:$0xff] %vm257_vm2, %v802_v16  ;;  %895 = vst.msk [vmem:[#allocation2 + $0x61] sm:$0xff] %vm257_vm2, %v807_v19  ;;  %v4560_v25 = vld [vmem:[#allocation2 + $0xf8] sm:$0xff]  ;;  %v4632_v53 = vld [vmem:[#allocation2 + $0x108] sm:$0xff] }
 0x14d   : > { %892 = vst.msk [vmem:[#allocation2 + $0x39] sm:$0xff] %vm257_vm2, %v804_v24  ;;  %897 = vst.msk [vmem:[#allocation2 + $0x79] sm:$0xff] %vm257_vm2, %v809_v4  ;;  %v4572_v30 = vld [vmem:[#allocation2 + $0xf2] sm:$0xff]  ;;  %v4585_v36 = vld [vmem:[#allocation2 + $0xfa] sm:$0xff] }
 0x14e   : > { %894 = vst.msk [vmem:[#allocation2 + $0x51] sm:$0xff] %vm257_vm2, %v806_v6  ;;  %899 = vst.msk [vmem:[#allocation2 + $0x91] sm:$0xff] %vm257_vm2, %v811_v8  ;;  %v4622_v45 = vpop.permute.xlu0 %1370  ;;  %v4649_v19 = vld [vmem:[#allocation2 + $0x109] sm:$0xff] }
 0x14f   : > { %896 = vst.msk [vmem:[#allocation2 + $0x69] sm:$0xff] %vm257_vm2, %v808_v5  ;;  %901 = vst.msk [vmem:[#allocation2 + $0xa9] sm:$0xff] %vm257_vm2, %v813_v7  ;;  %v1133_v24 = vld [vmem:[#allocation2 + $0x110] sm:$0xff] }
 0x150   : > { %898 = vst.msk [vmem:[#allocation2 + $0x81] sm:$0xff] %vm257_vm2, %v810_v13  ;;  %903 = vst.msk [vmem:[#allocation2 + $0xc1] sm:$0xff] %vm257_vm2, %v815_v15  ;;  %v4665_v13 = vld [vmem:[#allocation2 + $0x10a] sm:$0xff] }
 0x151   : > { %900 = vst.msk [vmem:[#allocation2 + $0x99] sm:$0xff] %vm257_vm2, %v812_v9  ;;  %904 = vst.msk [vmem:[#allocation2 + $0xc9] sm:$0xff] %vm257_vm2, %v816_v14  ;;  %v4484_v26 = vld [vmem:[#allocation2 + $0x31] sm:$0xff] }
 0x152   : > { %902 = vst.msk [vmem:[#allocation2 + $0xb1] sm:$0xff] %vm257_vm2, %v814_v23  ;;  %905 = vst.msk [vmem:[#allocation2 + $0xd9] sm:$0xff] %vm257_vm2, %v817_v29  ;;  %v955_v32 = vld [vmem:[#allocation2 + $0x19] sm:$0xff]  ;;  %1250 = vrot.lane.b32.xlu0 %v4484_v26, %s4049_s28  ;;  %v4489_v35 = vld [vmem:[#allocation2 + $0x49] sm:$0xff] }
 0x153   : > { %906 = vst.msk [vmem:[#allocation2 + $0xe1] sm:$0xff] %vm257_vm2, %v818_v20  ;;  %1246 = vrot.lane.b32.xlu1 %v955_v32, %s4049_s28  ;;  %v956_v38 = vld [vmem:[#allocation2 + $0x21] sm:$0xff]  ;;  %v4529_v55 = vld [vmem:[#allocation2 + $0x18] sm:$0xff]  ;;  %v4553_v17 = vld [vmem:[#allocation2 + $0x30] sm:$0xff] }
 0x154   : > { %v4494_v41 = vld [vmem:[#allocation2 + $0x61] sm:$0xff]  ;;  %v4496_v44 = vld [vmem:[#allocation2 + $0x39] sm:$0xff]  ;;  %v4667_v15 = vld [vmem:[#allocation2 + $0x111] sm:$0xff] }
 0x155   : > { %v4502_v28 = vld [vmem:[#allocation2 + $0x79] sm:$0xff]  ;;  %v4504_v33 = vld [vmem:[#allocation2 + $0x51] sm:$0xff]  ;;  %v1082_v18 = vld [vmem:[#allocation2 + $0x22] sm:$0xff] }
 0x156   : > { %1254 = vrot.lane.b32.xlu0 %v4489_v35, %s4049_s28  ;;  %v965_v37 = vld [vmem:[#allocation2 + $0x91] sm:$0xff]  ;;  %v4510_v42 = vld [vmem:[#allocation2 + $0x69] sm:$0xff]  ;;  %v4539_v1 = vld [vmem:[#allocation2 + $0x20] sm:$0xff] }
 0x157   : > { %1248 = vrot.lane.b32.xlu1 %v956_v38, %s4049_s28  ;;  %v967_v46 = vld [vmem:[#allocation2 + $0xa9] sm:$0xff]  ;;  %v4515_v48 = vld [vmem:[#allocation2 + $0x81] sm:$0xff]  ;;  %v4566_v27 = vld [vmem:[#allocation2 + $0x38] sm:$0xff] }
 0x158   : > { %v969_v49 = vld [vmem:[#allocation2 + $0xc1] sm:$0xff]  ;;  %v966_v51 = vld [vmem:[#allocation2 + $0x99] sm:$0xff]  ;;  %v970_v54 = vld [vmem:[#allocation2 + $0xc9] sm:$0xff] }
 0x159   : > { %v1001_v2 = vld [vmem:[#allocation2 + $0xc2] sm:$0xff]  ;;  %v968_v3 = vld [vmem:[#allocation2 + $0xb1] sm:$0xff]  ;;  %v1065_v58 = vld [vmem:[#allocation2 + $0xd9] sm:$0xff] }
 0x15a   : > { %1258 = vrot.lane.b32.xlu0 %v4494_v41, %s4049_s28  ;;  %v4524_v52 = vld [vmem:[#allocation2 + $0xd8] sm:$0xff]  ;;  %v1002_v57 = vld [vmem:[#allocation2 + $0xca] sm:$0xff]  ;;  %v4534_v60 = vld [vmem:[#allocation2 + $0xe0] sm:$0xff] }
 0x15b   : > { %1252 = vrot.lane.b32.xlu1 %v4496_v44, %s4049_s28  ;;  %v1097_v61 = vld [vmem:[#allocation2 + $0xda] sm:$0xff]  ;;  %v1098_v12 = vld [vmem:[#allocation2 + $0xe2] sm:$0xff]  ;;  %v4583_v34 = vld [vmem:[#allocation2 + $0x32] sm:$0xff] }
 0x15c   : > { %v1066_v63 = vld [vmem:[#allocation2 + $0xe1] sm:$0xff]  ;;  %v928_v8 = vld [vmem:[#allocation2 + $0x50] sm:$0xff] }
 0x15d   : > { %v1081_v0 = vld [vmem:[#allocation2 + $0x1a] sm:$0xff]  ;;  %v927_v62 = vld [vmem:[#allocation2 + $0x48] sm:$0xff] }
 0x15e   : > { %1262 = vrot.lane.b32.xlu0 %v4502_v28, %s4049_s28  ;;  %v4593_v39 = vld [vmem:[#allocation2 + $0x3a] sm:$0xff]  ;;  %v4683_v20 = vld [vmem:[#allocation2 + $0x4a] sm:$0xff] }
 0x15f   : > { %1256 = vrot.lane.b32.xlu1 %v4504_v33, %s4049_s28 }
 0x162   : > { %1266 = vrot.lane.b32.xlu0 %v965_v37, %s4049_s28 }
 0x163   : > { %1260 = vrot.lane.b32.xlu1 %v4510_v42, %s4049_s28 }
 0x166   : > { %1270 = vrot.lane.b32.xlu0 %v967_v46, %s4049_s28  ;;  %v4699_v46 = vld [vmem:[#allocation2 + $0x52] sm:$0xff] }
 0x167   : > { %1264 = vrot.lane.b32.xlu1 %v4515_v48, %s4049_s28 }
 0x16a   : > { %1274 = vrot.lane.b32.xlu0 %v969_v49, %s4049_s28 }
 0x16b   : > { %1268 = vrot.lane.b32.xlu1 %v966_v51, %s4049_s28 }
 0x16e   : > { %1402 = vrot.lane.b32.xlu0 %v1001_v2, %s4050_s29 }
 0x16f   : > { %1272 = vrot.lane.b32.xlu1 %v968_v3, %s4049_s28 }
 0x172   : > { %1530 = vrot.lane.b32.xlu0 %v4524_v52, %s4051_s30 }
 0x173   : > { %1276 = vrot.lane.b32.xlu1 %v970_v54, %s4049_s28 }
 0x176   : > { %1498 = vrot.lane.b32.xlu0 %v4529_v55, %s4051_s30 }
 0x177   : > { %1404 = vrot.lane.b32.xlu1 %v1002_v57, %s4050_s29 }
 0x17a   : > { %1658 = vrot.lane.b32.xlu0 %v1065_v58, %s4052_s6 }
 0x17b   : > { %1532 = vrot.lane.b32.xlu1 %v4534_v60, %s4051_s30 }
 0x17e   : > { %1626 = vrot.lane.b32.xlu0 %v955_v32, %s4052_s6 }
 0x17f   : > { %1500 = vrot.lane.b32.xlu1 %v4539_v1, %s4051_s30 }
 0x182   : > { %1786 = vrot.lane.b32.xlu0 %v1097_v61, %s4053_s7 }
 0x183   : > { %1660 = vrot.lane.b32.xlu1 %v1066_v63, %s4052_s6 }
 0x186   : > { %1754 = vrot.lane.b32.xlu0 %v1081_v0, %s4053_s7 }
 0x187   : > { %1628 = vrot.lane.b32.xlu1 %v956_v38, %s4052_s6 }
 0x18a   : > { %1914 = vrot.lane.b32.xlu0 %v4548_v11, %s4054_s8 }
 0x18b   : > { %1788 = vrot.lane.b32.xlu1 %v1098_v12, %s4053_s7 }
 0x18e   : > { %1882 = vrot.lane.b32.xlu0 %v4553_v17, %s4054_s8 }
 0x18f   : > { %1756 = vrot.lane.b32.xlu1 %v1082_v18, %s4053_s7 }
 0x192   : > { %2042 = vrot.lane.b32.xlu0 %v4558_v22, %s4055_s9 }
 0x193   : > { %1916 = vrot.lane.b32.xlu1 %v4560_v25, %s4054_s8 }
 0x196   : > { %2010 = vrot.lane.b32.xlu0 %v4484_v26, %s4055_s9 }
 0x197   : > { %1884 = vrot.lane.b32.xlu1 %v4566_v27, %s4054_s8 }
 0x19a   : > { %2170 = vrot.lane.b32.xlu0 %v4572_v30, %s4056_s10 }
 0x19b   : > { %2044 = vrot.lane.b32.xlu1 %v4574_v31, %s4055_s9 }
 0x19e   : > { %1278 = vrot.lane.b32.xlu0 %v1065_v58, %s4049_s28 }
 0x19f   : > { %2012 = vrot.lane.b32.xlu1 %v4496_v44, %s4055_s9 }
 0x1a2   : > { %2138 = vrot.lane.b32.xlu0 %v4583_v34, %s4056_s10 }
 0x1a3   : > { %2172 = vrot.lane.b32.xlu1 %v4585_v36, %s4056_s10 }
 0x1a6   : > { %1406 = vrot.lane.b32.xlu0 %v1097_v61, %s4050_s29 }
 0x1a7   : > { %1280 = vrot.lane.b32.xlu1 %v1066_v63, %s4049_s28 }
 0x1aa   : > { %1374 = vrot.lane.b32.xlu0 %v1081_v0, %s4050_s29 }
 0x1ab   : > { %2140 = vrot.lane.b32.xlu1 %v4593_v39, %s4056_s10 }
 0x1ae   : > { %1534 = vrot.lane.b32.xlu0 %v4548_v11, %s4051_s30 }
 0x1af   : > { %1408 = vrot.lane.b32.xlu1 %v1098_v12, %s4050_s29 }
 0x1b2   : > { %1502 = vrot.lane.b32.xlu0 %v4553_v17, %s4051_s30 }
 0x1b3   : > { %1376 = vrot.lane.b32.xlu1 %v1082_v18, %s4050_s29 }
 0x1b6   : > { %1662 = vrot.lane.b32.xlu0 %v4558_v22, %s4052_s6 }
 0x1b7   : > { %1536 = vrot.lane.b32.xlu1 %v4560_v25, %s4051_s30 }
 0x1ba   : > { %1630 = vrot.lane.b32.xlu0 %v4484_v26, %s4052_s6  ;;  %v4685_v26 = vld [vmem:[#allocation2 + $0x112] sm:$0xff] }
 0x1bb   : > { %1504 = vrot.lane.b32.xlu1 %v4566_v27, %s4051_s30 }
 0x1be   : > { %1790 = vrot.lane.b32.xlu0 %v4572_v30, %s4053_s7 }
 0x1bf   : > { %1664 = vrot.lane.b32.xlu1 %v4574_v31, %s4052_s6 }
 0x1c2   : > { %1758 = vrot.lane.b32.xlu0 %v4583_v34, %s4053_s7 }
 0x1c3   : > { %1632 = vrot.lane.b32.xlu1 %v4496_v44, %s4052_s6 }
 0x1c4   : > { %v4628_v47 = vpop.permute.xlu0 %1250 }
 0x1c5   : > { %v4630_v50 = vpop.permute.xlu1 %1246 }
 0x1c6   : > { %1918 = vrot.lane.b32.xlu0 %v4632_v53, %s4054_s8 }
 0x1c7   : > { %1792 = vrot.lane.b32.xlu1 %v4585_v36, %s4053_s7 }
 0x1c8   : > { %v4638_v56 = vpop.permute.xlu0 %1254 }
 0x1c9   : > { %v4640_v59 = vpop.permute.xlu1 %1248 }
 0x1ca   : > { %1886 = vrot.lane.b32.xlu0 %v927_v62, %s4054_s8 }
 0x1cb   : > { %1760 = vrot.lane.b32.xlu1 %v4593_v39, %s4053_s7 }
 0x1cc   : > { %v4645_v10 = vpop.permute.xlu0 %1258 }
 0x1cd   : > { %v4647_v16 = vpop.permute.xlu1 %1252 }
 0x1ce   : > { %2046 = vrot.lane.b32.xlu0 %v4649_v19, %s4055_s9 }
 0x1cf   : > { %1920 = vrot.lane.b32.xlu1 %v1133_v24, %s4054_s8 }
 0x1d0   : > { %v4654_v4 = vpop.permute.xlu0 %1262 }
 0x1d1   : > { %6143 = vst [vmem:[#allocation3_spill] sm:$0xff] %v4654_v4  ;;  %v4656_v6 = vpop.permute.xlu1 %1256 }
 0x1d2   : > { %2014 = vrot.lane.b32.xlu0 %v4489_v35, %s4055_s9 }
 0x1d3   : > { %1888 = vrot.lane.b32.xlu1 %v928_v8, %s4054_s8 }
 0x1d4   : > { %v4661_v5 = vpop.permute.xlu0 %1266 }
 0x1d5   : > { %6144 = vst [vmem:[#allocation4_spill] sm:$0xff] %v4661_v5  ;;  %v4663_v7 = vpop.permute.xlu1 %1260 }
 0x1d6   : > { %2174 = vrot.lane.b32.xlu0 %v4665_v13, %s4056_s10 }
 0x1d7   : > { %2048 = vrot.lane.b32.xlu1 %v4667_v15, %s4055_s9 }
 0x1d8   : > { %v4673_v9 = vpop.permute.xlu0 %1270 }
 0x1d9   : > { %6145 = vst [vmem:[#allocation5_spill] sm:$0xff] %v4673_v9  ;;  %v4675_v14 = vpop.permute.xlu1 %1264  ;;  %v921_v9 = vld [vmem:[#allocation2] sm:$0xff] }
 0x1da   : > { %6146 = vst [vmem:[#allocation6_spill] sm:$0xff] %v4675_v14  ;;  %1282 = vrot.lane.b32.xlu0 %v4558_v22, %s4049_s28 }
 0x1db   : > { %2016 = vrot.lane.b32.xlu1 %v4504_v33, %s4055_s9 }
 0x1dc   : > { %v1275_v23 = vpop.permute.xlu0 %1274 }
 0x1dd   : > { %v4681_v29 = vpop.permute.xlu1 %1268 }
 0x1de   : > { %6147 = vst [vmem:[#allocation7_spill] sm:$0xff] %v4681_v29  ;;  %2142 = vrot.lane.b32.xlu0 %v4683_v20, %s4056_s10 }
 0x1df   : > { %2176 = vrot.lane.b32.xlu1 %v4685_v26, %s4056_s10 }
 0x1e0   : > { %v1403_v32 = vpop.permute.xlu0 %1402 }
 0x1e1   : > { %v4691_v38 = vpop.permute.xlu1 %1272 }
 0x1e2   : > { %6148 = vst [vmem:[#allocation8_spill] sm:$0xff] %v4691_v38  ;;  %1410 = vrot.lane.b32.xlu0 %v4572_v30, %s4050_s29  ;;  %v4744_v30 = vld [vmem:[#allocation2 + $0x120] sm:$0xff] }
 0x1e3   : > { %1284 = vrot.lane.b32.xlu1 %v4574_v31, %s4049_s28 }
 0x1e4   : > { %v1531_v44 = vpop.permute.xlu0 %1530 }
 0x1e5   : > { %v4697_v37 = vpop.permute.xlu1 %1276 }
 0x1e6   : > { %1378 = vrot.lane.b32.xlu0 %v4583_v34, %s4050_s29 }
 0x1e7   : > { %2144 = vrot.lane.b32.xlu1 %v4699_v46, %s4056_s10 }
 0x1e8   : > { %v4705_v49 = vpop.permute.xlu0 %1498 }
 0x1e9   : > { %v4707_v51 = vpop.permute.xlu1 %1404 }
 0x1ea   : > { %1538 = vrot.lane.b32.xlu0 %v4632_v53, %s4051_s30 }
 0x1eb   : > { %1412 = vrot.lane.b32.xlu1 %v4585_v36, %s4050_s29  ;;  %v4750_v36 = vld [vmem:[#allocation2 + $0x60] sm:$0xff] }
 0x1ec   : > { %v1659_v2 = vpop.permute.xlu0 %1658 }
 0x1ed   : > { %v4713_v3 = vpop.permute.xlu1 %1532 }
 0x1ee   : > { %1506 = vrot.lane.b32.xlu0 %v927_v62, %s4051_s30 }
 0x1ef   : > { %1380 = vrot.lane.b32.xlu1 %v4593_v39, %s4050_s29  ;;  %v937_v39 = vld [vmem:[#allocation2 + $0xc0] sm:$0xff] }
 0x1f0   : > { %v4718_v54 = vpop.permute.xlu0 %1626 }
 0x1f1   : > { %v4720_v57 = vpop.permute.xlu1 %1500 }
 0x1f2   : > { %1666 = vrot.lane.b32.xlu0 %v4649_v19, %s4052_s6 }
 0x1f3   : > { %1540 = vrot.lane.b32.xlu1 %v1133_v24, %s4051_s30 }
 0x1f4   : > { %v1787_v58 = vpop.permute.xlu0 %1786 }
 0x1f5   : > { %v4725_v61 = vpop.permute.xlu1 %1660 }
 0x1f6   : > { %1634 = vrot.lane.b32.xlu0 %v4489_v35, %s4052_s6 }
 0x1f7   : > { %1508 = vrot.lane.b32.xlu1 %v928_v8, %s4051_s30 }
 0x1f8   : > { %v4730_v63 = vpop.permute.xlu0 %1754 }
 0x1f9   : > { %v4732_v0 = vpop.permute.xlu1 %1628 }
 0x1fa   : > { %1794 = vrot.lane.b32.xlu0 %v4665_v13, %s4053_s7 }
 0x1fb   : > { %1668 = vrot.lane.b32.xlu1 %v4667_v15, %s4052_s6 }
 0x1fc   : > { %v1915_v12 = vpop.permute.xlu0 %1914 }
 0x1fd   : > { %v1789_v18 = vpop.permute.xlu1 %1788 }
 0x1fe   : > { %1762 = vrot.lane.b32.xlu0 %v4683_v20, %s4053_s7 }
 0x1ff   : > { %1636 = vrot.lane.b32.xlu1 %v4504_v33, %s4052_s6  ;;  %v2250_v33 = vsel %vm257_vm2, %v937_v39, %v1275_v23  ;;  %v4762_v23 = vld [vmem:[#allocation2 + $0x121] sm:$0xff] }
 0x200   : > { %v1883_v35 = vpop.permute.xlu0 %1882  ;;  %v2283_v62 = vsel %vm2266_vm5, %v2250_v33, %v1403_v32  ;;  %v4764_v39 = vld [vmem:[#allocation2 + $0x128] sm:$0xff] }
 0x201   : > { %v4742_v22 = vpop.permute.xlu1 %1756  ;;  %v2316_v24 = vsel %vm2299_vm4, %v2283_v62, %v1531_v44  ;;  %v2234_v44 = vsel %vm257_vm2, %v921_v9, %v4604_v21 }
 0x202   : > { %1922 = vrot.lane.b32.xlu0 %v4744_v30, %s4054_s8  ;;  %v2349_v29 = vsel %vm2332_vm6, %v2316_v24, %v1659_v2  ;;  %v4775_v24 = vld [vmem:[#allocation2 + $0x68] sm:$0xff]  ;;  %v2267_v21 = vsel %vm2266_vm5, %v2234_v44, %v4622_v45 }
 0x203   : > { %1796 = vrot.lane.b32.xlu1 %v4685_v26, %s4053_s7  ;;  %v2382_v5 = vsel %vm2365_vm7, %v2349_v29, %v1787_v58  ;;  %v938_v29 = vld [vmem:[#allocation2 + $0xc8] sm:$0xff] }
 0x204   : > { %v2043_v31 = vpop.permute.xlu0 %2042  ;;  %v2415_v32 = vsel %vm2398_vm8, %v2382_v5, %v1915_v12  ;;  %v2251_v14 = vsel %vm257_vm2, %v938_v29, %v4697_v37  ;;  %v2300_v12 = vsel %vm2299_vm4, %v2267_v21, %v4705_v49 }
 0x205   : > { %v1917_v34 = vpop.permute.xlu1 %1916  ;;  %v2448_v2 = vsel %vm2431_vm9, %v2415_v32, %v2043_v31  ;;  %v2284_v5 = vsel %vm2266_vm5, %v2251_v14, %v4707_v51  ;;  %v4801_v14 = vld [vmem:[#allocation2 + $0x122] sm:$0xff] }
 0x206   : > { %1890 = vrot.lane.b32.xlu0 %v4750_v36, %s4054_s8  ;;  %v2317_v37 = vsel %vm2299_vm4, %v2284_v5, %v4713_v3  ;;  %v4803_v51 = vld [vmem:[#allocation2 + $0x129] sm:$0xff] }
 0x207   : > { %1764 = vrot.lane.b32.xlu1 %v4699_v46, %s4053_s7  ;;  %v2350_v45 = vsel %vm2332_vm6, %v2317_v37, %v4725_v61 }
 0x208   : > { %v2011_v8 = vpop.permute.xlu0 %2010  ;;  %v2383_v3 = vsel %vm2365_vm7, %v2350_v45, %v1789_v18 }
 0x209   : > { %v4759_v38 = vpop.permute.xlu1 %1884 }
 0x20a   : > { %2050 = vrot.lane.b32.xlu0 %v4762_v23, %s4055_s9 }
 0x20b   : > { %1924 = vrot.lane.b32.xlu1 %v4764_v39, %s4054_s8 }
 0x20c   : > { %v2171_v33 = vpop.permute.xlu0 %2170 }
 0x20d   : > { %v2045_v62 = vpop.permute.xlu1 %2044  ;;  %v2481_v58 = vsel %vm2464_vm10, %v2448_v2, %v2171_v33  ;;  %v922_v2 = vld [vmem:[#allocation2 + $0x8] sm:$0xff]  ;;  %v2333_v33 = vsel %vm2332_vm6, %v2300_v12, %v4718_v54 }
 0x20e   : > { %v2551_v4 = vsel %vm2498_vm11, %v2481_v58, 0  ;;  %2018 = vrot.lane.b32.xlu0 %v4494_v41, %s4055_s9  ;;  %v2366_v49 = vsel %vm2365_vm7, %v2333_v33, %v4730_v63  ;;  %v2235_v61 = vsel %vm257_vm2, %v922_v2, %v4610_v40 }
 0x20f   : > { %1892 = vrot.lane.b32.xlu1 %v4775_v24, %s4054_s8  ;;  %v2647_v9 = vand.u32 4294901760, %v2551_v4  ;;  %v2399_v54 = vsel %vm2398_vm8, %v2366_v49, %v1883_v35  ;;  %v2268_v40 = vsel %vm2266_vm5, %v2235_v61, %v4620_v43  ;;  %v4843_v43 = vld [vmem:[#allocation2 + $0x12a] sm:$0xff] }
 0x210   : > { %v4793_v31 = vpop.permute.xlu0 %1278  ;;  %v2432_v29 = vsel %vm2431_vm9, %v2399_v54, %v2011_v8  ;;  %v2301_v8 = vsel %vm2299_vm4, %v2268_v40, %v4720_v57 }
 0x211   : > { %v2013_v32 = vpop.permute.xlu1 %2012  ;;  %v4799_v44 = vsub.f32 %v2551_v4, %v2647_v9  ;;  %v2416_v4 = vsel %vm2398_vm8, %v2383_v3, %v1917_v34  ;;  %v4841_v3 = vld [vmem:[#allocation2 + $0x62] sm:$0xff] }
 0x212   : > { %2178 = vrot.lane.b32.xlu0 %v4801_v14, %s4056_s10  ;;  %v2449_v58 = vsel %vm2431_vm9, %v2416_v4, %v2045_v62 }
 0x213   : > { %6149 = vst [vmem:[#allocation9_spill] sm:$0xff] %v4799_v44  ;;  %2052 = vrot.lane.b32.xlu1 %v4803_v51, %s4055_s9  ;;  %v2821_v62 = vand.u32 4294901760, %v4799_v44 }
 0x214   : > { %v2139_v63 = vpop.permute.xlu0 %2138 }
 0x215   : > { %v2173_v21 = vpop.permute.xlu1 %2172  ;;  %v2465_v18 = vsel %vm2464_vm10, %v2432_v29, %v2139_v63 }
 0x216   : > { %v2482_v5 = vsel %vm2464_vm10, %v2449_v58, %v2173_v21  ;;  %v2503_v12 = vsel %vm2498_vm11, %v2465_v18, 0  ;;  %1286 = vrot.lane.b32.xlu0 %v4649_v19, %s4049_s28  ;;  %v2334_v19 = vsel %vm2332_vm6, %v2301_v8, %v4732_v0 }
 0x217   : > { %v2554_v37 = vsel %vm2498_vm11, %v2482_v5, 0  ;;  %2020 = vrot.lane.b32.xlu1 %v4510_v42, %s4055_s9  ;;  %v2599_v35 = vand.u32 4294901760, %v2503_v12  ;;  %v2367_v57 = vsel %vm2365_vm7, %v2334_v19, %v4742_v22 }
 0x218   : > { %v2650_v34 = vand.u32 4294901760, %v2554_v37  ;;  %v4831_v2 = vpop.permute.xlu0 %1406  ;;  %v2400_v0 = vsel %vm2398_vm8, %v2367_v57, %v4759_v38  ;;  %v4880_v57 = vld [vmem:[#allocation2 + $0x6a] sm:$0xff] }
 0x219   : > { %v4833_v33 = vpop.permute.xlu1 %1280  ;;  %v4837_v45 = vsub.f32 %v2503_v12, %v2599_v35  ;;  %v2433_v29 = vsel %vm2431_vm9, %v2400_v0, %v2013_v32 }
 0x21a   : > { %v4839_v49 = vsub.f32 %v2554_v37, %v2650_v34  ;;  %2146 = vrot.lane.b32.xlu0 %v4841_v3, %s4056_s10  ;;  %v4851_v54 = vpack.c.bf16 %v2650_v34, %v2647_v9  ;;  %v2822_v9 = vsub.f32 %v4799_v44, %v2821_v62  ;;  %v6199_v44 = vld [vmem:[#allocation5_spill] sm:$0xff] }
 0x21b   : > { %6150 = vst [vmem:[#allocation10_spill] sm:$0xff] %v4837_v45  ;;  %2180 = vrot.lane.b32.xlu1 %v4843_v43, %s4056_s10  ;;  %v2709_v18 = vand.u32 4294901760, %v4837_v45 }
 0x21c   : > { %6151 = vst [vmem:[#allocation11_spill] sm:$0xff] %v4839_v49  ;;  %6152 = vst [vmem:[#allocation12_spill] sm:$0xff] %v4851_v54  ;;  %v2828_v4 = vand.u32 4294901760, %v4839_v49  ;;  %3789 = vmatprep.subr.bf16.mxu0 %v4851_v54  ;;  %3885 = vmatprep.subr.bf16.mxu1 %v4851_v54  ;;  %v4861_v22 = vpop.permute.xlu0 %1374  ;;  %v2823_v34 = vand.u32 4294901760, %v2822_v9 }
 0x21d   : > { %v2141_v58 = vpop.permute.xlu1 %2140 }
 0x21e   : > { %v2466_v63 = vsel %vm2464_vm10, %v2433_v29, %v2141_v58  ;;  %v2829_v38 = vsub.f32 %v4839_v49, %v2828_v4  ;;  %1414 = vrot.lane.b32.xlu0 %v4665_v13, %s4050_s29  ;;  %v4871_v32 = vpack.c.bf16 %v2828_v4, %v2821_v62 }
 0x21f   : > { %v2506_v21 = vsel %vm2498_vm11, %v2466_v63, 0  ;;  %1288 = vrot.lane.b32.xlu1 %v4667_v15, %s4049_s28  ;;  %v2710_v15 = vsub.f32 %v4837_v45, %v2709_v18  ;;  %v4954_v45 = vld [vmem:[#allocation2 + $0x139] sm:$0xff] }
 0x220   : > { %v2602_v5 = vand.u32 4294901760, %v2506_v21  ;;  %v2830_v12 = vand.u32 4294901760, %v2829_v38  ;;  %v1535_v37 = vpop.permute.xlu0 %1534 }
 0x221   : > { %v4874_v40 = vpop.permute.xlu1 %1408  ;;  %v2711_v58 = vand.u32 4294901760, %v2710_v15 }
 0x222   : > { %v4876_v8 = vpack.c.bf16 %v2602_v5, %v2599_v35  ;;  %v4878_v19 = vsub.f32 %v2506_v21, %v2602_v5  ;;  %1382 = vrot.lane.b32.xlu0 %v4683_v20, %s4050_s29  ;;  %v4886_v13 = vpack.c.bf16 %v2830_v12, %v2823_v34 }
 0x223   : > { %2148 = vrot.lane.b32.xlu1 %v4880_v57, %s4056_s10 }
 0x224   : > { %6153 = vst [vmem:[#allocation13_spill] sm:$0xff] %v4876_v8  ;;  %6154 = vst [vmem:[#allocation14_spill] sm:$0xff] %v4878_v19  ;;  %v2716_v62 = vand.u32 4294901760, %v4878_v19  ;;  %3791 = vmatpush3.bf16.xpose.msra.mxu0 %v4876_v8  ;;  %3887 = vmatpush3.bf16.xpose.msra.mxu1 %v4876_v8  ;;  %v4894_v0 = vpop.permute.xlu0 %1502 }
 0x225   : > { %v4896_v4 = vpop.permute.xlu1 %1376 }
 0x226   : > { %v2717_v20 = vsub.f32 %v4878_v19, %v2716_v62  ;;  %v4899_v29 = vpack.c.bf16 %v2716_v62, %v2709_v18  ;;  %1542 = vrot.lane.b32.xlu0 %v4744_v30, %s4051_s30  ;;  %v4956_v19 = vld [vmem:[#allocation2 + $0x140] sm:$0xff] }
 0x227   : > { %1416 = vrot.lane.b32.xlu1 %v4685_v26, %s4050_s29 }
 0x228   : > { %v2718_v9 = vand.u32 4294901760, %v2717_v20  ;;  %v1663_v63 = vpop.permute.xlu0 %1662  ;;  %v4939_v20 = vld [vmem:[#allocation2 + $0x78] sm:$0xff] }
 0x229   : > { %v1537_v38 = vpop.permute.xlu1 %1536 }
 0x22a   : > { %v4905_v21 = vpack.c.bf16 %v2718_v9, %v2711_v58  ;;  %1510 = vrot.lane.b32.xlu0 %v4750_v36, %s4051_s30  ;;  %v2252_v58 = vsel %vm257_vm2, %v4524_v52, %v4793_v31 }
 0x22b   : > { %1384 = vrot.lane.b32.xlu1 %v4699_v46, %s4050_s29 }
 0x22c   : > { %v1631_v18 = vpop.permute.xlu0 %1630 }
 0x22d   : > { %v4911_v5 = vpop.permute.xlu1 %1504 }
 0x22e   : > { %1670 = vrot.lane.b32.xlu0 %v4762_v23, %s4052_s6 }
 0x22f   : > { %1544 = vrot.lane.b32.xlu1 %v4764_v39, %s4051_s30 }
 0x230   : > { %v1791_v26 = vpop.permute.xlu0 %1790 }
 0x231   : > { %v1665_v30 = vpop.permute.xlu1 %1664 }
 0x232   : > { %1638 = vrot.lane.b32.xlu0 %v4494_v41, %s4052_s6 }
 0x233   : > { %1512 = vrot.lane.b32.xlu1 %v4775_v24, %s4051_s30  ;;  %v4933_v24 = vld [vmem:[#allocation2 + $0x138] sm:$0xff] }
 0x234   : > { %v1759_v36 = vpop.permute.xlu0 %1758 }
 0x235   : > { %v4921_v12 = vpop.permute.xlu1 %1632 }
 0x236   : > { %1798 = vrot.lane.b32.xlu0 %v4801_v14, %s4053_s7 }
 0x237   : > { %1672 = vrot.lane.b32.xlu1 %v4803_v51, %s4052_s6 }
 0x238   : > { %v1919_v46 = vpop.permute.xlu0 %1918 }
 0x239   : > { %v1793_v34 = vpop.permute.xlu1 %1792 }
 0x23a   : > { %1766 = vrot.lane.b32.xlu0 %v4841_v3, %s4053_s7 }
 0x23b   : > { %1640 = vrot.lane.b32.xlu1 %v4510_v42, %s4052_s6  ;;  %v2285_v42 = vsel %vm2266_vm5, %v2252_v58, %v4831_v2 }
 0x23c   : > { %v1887_v41 = vpop.permute.xlu0 %1886  ;;  %v2318_v9 = vsel %vm2299_vm4, %v2285_v42, %v1535_v37  ;;  %v4965_v42 = vld [vmem:[#allocation2 + $0x80] sm:$0xff] }
 0x23d   : > { %v4931_v39 = vpop.permute.xlu1 %1760  ;;  %v2351_v8 = vsel %vm2332_vm6, %v2318_v9, %v1663_v63 }
 0x23e   : > { %1926 = vrot.lane.b32.xlu0 %v4933_v24, %s4054_s8  ;;  %v2384_v52 = vsel %vm2365_vm7, %v2351_v8, %v1791_v26  ;;  %v2236_v8 = vsel %vm257_vm2, %v4529_v55, %v4630_v50  ;;  %v2253_v26 = vsel %vm257_vm2, %v4534_v60, %v4833_v33 }
 0x23f   : > { %1800 = vrot.lane.b32.xlu1 %v4843_v43, %s4053_s7  ;;  %v2417_v31 = vsel %vm2398_vm8, %v2384_v52, %v1919_v46  ;;  %v2269_v46 = vsel %vm2266_vm5, %v2236_v8, %v4861_v22  ;;  %v4994_v22 = vld [vmem:[#allocation2 + $0x141] sm:$0xff] }
 0x240   : > { %v2047_v15 = vpop.permute.xlu0 %2046  ;;  %v2302_v55 = vsel %vm2299_vm4, %v2269_v46, %v4894_v0 }
 0x241   : > { %v1921_v62 = vpop.permute.xlu1 %1920  ;;  %v2450_v2 = vsel %vm2431_vm9, %v2417_v31, %v2047_v15  ;;  %v2286_v15 = vsel %vm2266_vm5, %v2253_v26, %v4874_v40 }
 0x242   : > { %1894 = vrot.lane.b32.xlu0 %v4939_v20, %s4054_s8  ;;  %v2319_v60 = vsel %vm2299_vm4, %v2286_v15, %v1537_v38 }
 0x243   : > { %1768 = vrot.lane.b32.xlu1 %v4880_v57, %s4053_s7  ;;  %v2352_v31 = vsel %vm2332_vm6, %v2319_v60, %v1665_v30 }
 0x244   : > { %v2015_v35 = vpop.permute.xlu0 %2014 }
 0x245   : > { %v4951_v61 = vpop.permute.xlu1 %1888 }
 0x246   : > { %2054 = vrot.lane.b32.xlu0 %v4954_v45, %s4055_s9 }
 0x247   : > { %1928 = vrot.lane.b32.xlu1 %v4956_v19, %s4054_s8 }
 0x248   : > { %v2175_v37 = vpop.permute.xlu0 %2174 }
 0x249   : > { %v2049_v58 = vpop.permute.xlu1 %2048  ;;  %v2483_v63 = vsel %vm2464_vm10, %v2450_v2, %v2175_v37  ;;  %v4992_v37 = vld [vmem:[#allocation2 + $0x13a] sm:$0xff] }
 0x24a   : > { %v2557_v9 = vsel %vm2498_vm11, %v2483_v63, 0  ;;  %2022 = vrot.lane.b32.xlu0 %v4502_v28, %s4055_s9  ;;  %v2335_v28 = vsel %vm2332_vm6, %v2302_v55, %v1631_v18  ;;  %v2385_v63 = vsel %vm2365_vm7, %v2352_v31, %v1793_v34 }
 0x24b   : > { %1896 = vrot.lane.b32.xlu1 %v4965_v42, %s4054_s8  ;;  %v2653_v52 = vand.u32 4294901760, %v2557_v9  ;;  %v2368_v40 = vsel %vm2365_vm7, %v2335_v28, %v1759_v36  ;;  %v2418_v38 = vsel %vm2398_vm8, %v2385_v63, %v1921_v62  ;;  %v5032_v28 = vld [vmem:[#allocation2 + $0x7a] sm:$0xff] }
 0x24c   : > { %v4986_v50 = vpop.permute.xlu0 %1282  ;;  %v2401_v0 = vsel %vm2398_vm8, %v2368_v40, %v1887_v41  ;;  %v2451_v30 = vsel %vm2431_vm9, %v2418_v38, %v2049_v58 }
 0x24d   : > { %v2017_v33 = vpop.permute.xlu1 %2016  ;;  %v4990_v2 = vsub.f32 %v2557_v9, %v2653_v52  ;;  %v2434_v18 = vsel %vm2431_vm9, %v2401_v0, %v2015_v35  ;;  %v2237_v9 = vsel %vm257_vm2, %v4539_v1, %v4640_v59 }
 0x24e   : > { %2182 = vrot.lane.b32.xlu0 %v4992_v37, %s4056_s10  ;;  %v2270_v35 = vsel %vm2266_vm5, %v2237_v9, %v4896_v4  ;;  %v5034_v4 = vld [vmem:[#allocation2 + $0x142] sm:$0xff] }
 0x24f   : > { %6155 = vst [vmem:[#allocation15_spill] sm:$0xff] %v4990_v2  ;;  %2056 = vrot.lane.b32.xlu1 %v4994_v22, %s4055_s9  ;;  %v2303_v15 = vsel %vm2299_vm4, %v2270_v35, %v4911_v5  ;;  %v2835_v1 = vand.u32 4294901760, %v4990_v2 }
 0x250   : > { %v2143_v8 = vpop.permute.xlu0 %2142 }
 0x251   : > { %v2177_v26 = vpop.permute.xlu1 %2176  ;;  %v2467_v36 = vsel %vm2464_vm10, %v2434_v18, %v2143_v8 }
 0x252   : > { %v2484_v34 = vsel %vm2464_vm10, %v2451_v30, %v2177_v26  ;;  %v2509_v46 = vsel %vm2498_vm11, %v2467_v36, 0  ;;  %1290 = vrot.lane.b32.xlu0 %v4762_v23, %s4049_s28  ;;  %v2336_v23 = vsel %vm2332_vm6, %v2303_v15, %v4921_v12 }
 0x253   : > { %v2560_v41 = vsel %vm2498_vm11, %v2484_v34, 0  ;;  %2024 = vrot.lane.b32.xlu1 %v4515_v48, %s4055_s9  ;;  %v2605_v62 = vand.u32 4294901760, %v2509_v46  ;;  %v2369_v5 = vsel %vm2365_vm7, %v2336_v23, %v4931_v39 }
 0x254   : > { %v2656_v58 = vand.u32 4294901760, %v2560_v41  ;;  %v5022_v59 = vpop.permute.xlu0 %1410  ;;  %v2402_v12 = vsel %vm2398_vm8, %v2369_v5, %v4951_v61 }
 0x255   : > { %v5024_v55 = vpop.permute.xlu1 %1284  ;;  %v5028_v60 = vsub.f32 %v2509_v46, %v2605_v62  ;;  %v2435_v0 = vsel %vm2431_vm9, %v2402_v12, %v2017_v33 }
 0x256   : > { %v5030_v48 = vsub.f32 %v2560_v41, %v2656_v58  ;;  %2150 = vrot.lane.b32.xlu0 %v5032_v28, %s4056_s10  ;;  %v5042_v31 = vpack.c.bf16 %v2656_v58, %v2653_v52  ;;  %v2836_v52 = vsub.f32 %v4990_v2, %v2835_v1  ;;  %v5071_v58 = vld [vmem:[#allocation2 + $0x82] sm:$0xff] }
 0x257   : > { %6156 = vst [vmem:[#allocation16_spill] sm:$0xff] %v5028_v60  ;;  %2184 = vrot.lane.b32.xlu1 %v5034_v4, %s4056_s10  ;;  %v2723_v8 = vand.u32 4294901760, %v5028_v60  ;;  %v5567_v2 = vld [vmem:[#allocation2 + $0x182] sm:$0xff] }
 0x258   : > { %6157 = vst [vmem:[#allocation17_spill] sm:$0xff] %v5030_v48  ;;  %6158 = vst [vmem:[#allocation18_spill] sm:$0xff] %v5042_v31  ;;  %v2842_v40 = vand.u32 4294901760, %v5030_v48  ;;  %3793 = vmatprep.subr.bf16.mxu0 %v5042_v31  ;;  %3889 = vmatprep.subr.bf16.mxu1 %v5042_v31  ;;  %v5052_v39 = vpop.permute.xlu0 %1378  ;;  %v2837_v46 = vand.u32 4294901760, %v2836_v52 }
 0x259   : > { %v2145_v38 = vpop.permute.xlu1 %2144 }
 0x25a   : > { %v2468_v18 = vsel %vm2464_vm10, %v2435_v0, %v2145_v38  ;;  %v2843_v61 = vsub.f32 %v5030_v48, %v2842_v40  ;;  %1418 = vrot.lane.b32.xlu0 %v4801_v14, %s4050_s29  ;;  %v5062_v33 = vpack.c.bf16 %v2842_v40, %v2835_v1 }
 0x25b   : > { %v2512_v30 = vsel %vm2498_vm11, %v2468_v18, 0  ;;  %1292 = vrot.lane.b32.xlu1 %v4803_v51, %s4049_s28  ;;  %v2724_v51 = vsub.f32 %v5028_v60, %v2723_v8  ;;  %v5145_v60 = vld [vmem:[#allocation2 + $0x158] sm:$0xff] }
 0x25c   : > { %v2608_v26 = vand.u32 4294901760, %v2512_v30  ;;  %v2844_v36 = vand.u32 4294901760, %v2843_v61  ;;  %v1539_v34 = vpop.permute.xlu0 %1538 }
 0x25d   : > { %v5065_v9 = vpop.permute.xlu1 %1412  ;;  %v2725_v12 = vand.u32 4294901760, %v2724_v51 }
 0x25e   : > { %v5067_v41 = vpack.c.bf16 %v2608_v26, %v2605_v62  ;;  %v5069_v35 = vsub.f32 %v2512_v30, %v2608_v26  ;;  %1386 = vrot.lane.b32.xlu0 %v4841_v3, %s4050_s29  ;;  %v5077_v14 = vpack.c.bf16 %v2844_v36, %v2837_v46  ;;  %v1057_v30 = vld [vmem:[#allocation2 + $0x79] sm:$0xff] }
 0x25f   : > { %2152 = vrot.lane.b32.xlu1 %v5071_v58, %s4056_s10 }
 0x260   : > { %6159 = vst [vmem:[#allocation19_spill] sm:$0xff] %v5067_v41  ;;  %6160 = vst [vmem:[#allocation20_spill] sm:$0xff] %v5069_v35  ;;  %v2730_v15 = vand.u32 4294901760, %v5069_v35  ;;  %3795 = vmatpush3.bf16.xpose.msra.mxu0 %v5067_v41  ;;  %3891 = vmatpush3.bf16.xpose.msra.mxu1 %v5067_v41  ;;  %v5085_v1 = vpop.permute.xlu0 %1506  ;;  %v5143_v41 = vld [vmem:[#allocation2 + $0x151] sm:$0xff] }
 0x261   : > { %v5087_v23 = vpop.permute.xlu1 %1380 }
 0x262   : > { %v2731_v3 = vsub.f32 %v5069_v35, %v2730_v15  ;;  %v5090_v5 = vpack.c.bf16 %v2730_v15, %v2723_v8  ;;  %1546 = vrot.lane.b32.xlu0 %v4933_v24, %s4051_s30  ;;  %v5183_v35 = vld [vmem:[#allocation2 + $0x152] sm:$0xff] }
 0x263   : > { %1420 = vrot.lane.b32.xlu1 %v4843_v43, %s4050_s29 }
 0x264   : > { %v2732_v40 = vand.u32 4294901760, %v2731_v3  ;;  %v1667_v0 = vpop.permute.xlu0 %1666  ;;  %v5128_v3 = vld [vmem:[#allocation2 + $0x90] sm:$0xff] }
 0x265   : > { %v1541_v38 = vpop.permute.xlu1 %1540 }
 0x266   : > { %v5096_v52 = vpack.c.bf16 %v2732_v40, %v2725_v12  ;;  %1514 = vrot.lane.b32.xlu0 %v4939_v20, %s4051_s30  ;;  %v2254_v12 = vsel %vm257_vm2, %v4548_v11, %v4986_v50 }
 0x267   : > { %1388 = vrot.lane.b32.xlu1 %v4880_v57, %s4050_s29  ;;  %v2287_v40 = vsel %vm2266_vm5, %v2254_v12, %v5022_v59 }
 0x268   : > { %v1635_v18 = vpop.permute.xlu0 %1634 }
 0x269   : > { %v5102_v61 = vpop.permute.xlu1 %1508 }
 0x26a   : > { %1674 = vrot.lane.b32.xlu0 %v4954_v45, %s4052_s6 }
 0x26b   : > { %1548 = vrot.lane.b32.xlu1 %v4956_v19, %s4051_s30  ;;  %v1058_v19 = vld [vmem:[#allocation2 + $0x81] sm:$0xff] }
 0x26c   : > { %v1795_v43 = vpop.permute.xlu0 %1794 }
 0x26d   : > { %v1669_v24 = vpop.permute.xlu1 %1668 }
 0x26e   : > { %1642 = vrot.lane.b32.xlu0 %v1057_v30, %s4052_s6  ;;  %v2320_v30 = vsel %vm2299_vm4, %v2287_v40, %v1539_v34  ;;  %v5154_v40 = vld [vmem:[#allocation2 + $0x98] sm:$0xff] }
 0x26f   : > { %1516 = vrot.lane.b32.xlu1 %v4965_v42, %s4051_s30  ;;  %v5122_v42 = vld [vmem:[#allocation2 + $0x150] sm:$0xff]  ;;  %v2353_v63 = vsel %vm2332_vm6, %v2320_v30, %v1667_v0 }
 0x270   : > { %v1763_v20 = vpop.permute.xlu0 %1762  ;;  %v2386_v11 = vsel %vm2365_vm7, %v2353_v63, %v1795_v43  ;;  %v5157_v30 = vld [vmem:[#allocation2 + $0x91] sm:$0xff]  ;;  %v2238_v63 = vsel %vm257_vm2, %v4553_v17, %v4628_v47  ;;  %v2255_v43 = vsel %vm257_vm2, %v4560_v25, %v5024_v55 }
 0x271   : > { %v5111_v8 = vpop.permute.xlu1 %1636 }
 0x272   : > { %1802 = vrot.lane.b32.xlu0 %v4992_v37, %s4053_s7 }
 0x273   : > { %1676 = vrot.lane.b32.xlu1 %v4994_v22, %s4052_s6 }
 0x274   : > { %v1923_v57 = vpop.permute.xlu0 %1922 }
 0x275   : > { %v1797_v26 = vpop.permute.xlu1 %1796  ;;  %v2419_v50 = vsel %vm2398_vm8, %v2386_v11, %v1923_v57  ;;  %v2288_v11 = vsel %vm2266_vm5, %v2255_v43, %v5065_v9 }
 0x276   : > { %1770 = vrot.lane.b32.xlu0 %v5032_v28, %s4053_s7  ;;  %v2321_v25 = vsel %vm2299_vm4, %v2288_v11, %v1541_v38  ;;  %v2239_v11 = vsel %vm257_vm2, %v4566_v27, %v4647_v16 }
 0x277   : > { %1644 = vrot.lane.b32.xlu1 %v1058_v19, %s4052_s6 }
 0x278   : > { %v1891_v36 = vpop.permute.xlu0 %1890 }
 0x279   : > { %v5120_v46 = vpop.permute.xlu1 %1764 }
 0x27a   : > { %1930 = vrot.lane.b32.xlu0 %v5122_v42, %s4054_s8 }
 0x27b   : > { %1804 = vrot.lane.b32.xlu1 %v5034_v4, %s4053_s7 }
 0x27c   : > { %v2051_v51 = vpop.permute.xlu0 %2050 }
 0x27d   : > { %v1925_v15 = vpop.permute.xlu1 %1924  ;;  %v2452_v59 = vsel %vm2431_vm9, %v2419_v50, %v2051_v51  ;;  %v2271_v51 = vsel %vm2266_vm5, %v2238_v63, %v5052_v39  ;;  %v5185_v39 = vld [vmem:[#allocation2 + $0x159] sm:$0xff] }
 0x27e   : > { %1898 = vrot.lane.b32.xlu0 %v5128_v3, %s4054_s8  ;;  %v2304_v17 = vsel %vm2299_vm4, %v2271_v51, %v5085_v1  ;;  %v5199_v51 = vld [vmem:[#allocation2 + $0x99] sm:$0xff] }
 0x27f   : > { %1772 = vrot.lane.b32.xlu1 %v5071_v58, %s4053_s7 }
 0x280   : > { %v2019_v19 = vpop.permute.xlu0 %2018 }
 0x281   : > { %v5140_v62 = vpop.permute.xlu1 %1892 }
 0x282   : > { %2058 = vrot.lane.b32.xlu0 %v5143_v41, %s4055_s9 }
 0x283   : > { %1932 = vrot.lane.b32.xlu1 %v5145_v60, %s4054_s8 }
 0x284   : > { %v2179_v34 = vpop.permute.xlu0 %2178 }
 0x285   : > { %v2053_v12 = vpop.permute.xlu1 %2052  ;;  %v2485_v0 = vsel %vm2464_vm10, %v2452_v59, %v2179_v34  ;;  %v2337_v59 = vsel %vm2332_vm6, %v2304_v17, %v1635_v18  ;;  %v2354_v34 = vsel %vm2332_vm6, %v2321_v25, %v1669_v24 }
 0x286   : > { %v2563_v57 = vsel %vm2498_vm11, %v2485_v0, 0  ;;  %2026 = vrot.lane.b32.xlu0 %v5157_v30, %s4055_s9  ;;  %v2370_v9 = vsel %vm2365_vm7, %v2337_v59, %v1763_v20  ;;  %v2387_v63 = vsel %vm2365_vm7, %v2354_v34, %v1797_v26 }
 0x287   : > { %1900 = vrot.lane.b32.xlu1 %v5154_v40, %s4054_s8  ;;  %v2659_v50 = vand.u32 4294901760, %v2563_v57  ;;  %v2403_v1 = vsel %vm2398_vm8, %v2370_v9, %v1891_v36  ;;  %v2420_v38 = vsel %vm2398_vm8, %v2387_v63, %v1925_v15  ;;  %v5225_v63 = vld [vmem:[#allocation2 + $0x92] sm:$0xff] }
 0x288   : > { %v5177_v47 = vpop.permute.xlu0 %1286  ;;  %v2436_v18 = vsel %vm2431_vm9, %v2403_v1, %v2019_v19  ;;  %v2453_v24 = vsel %vm2431_vm9, %v2420_v38, %v2053_v12  ;;  %v2272_v19 = vsel %vm2266_vm5, %v2239_v11, %v5087_v23  ;;  %v5227_v23 = vld [vmem:[#allocation2 + $0x15a] sm:$0xff] }
 0x289   : > { %v2021_v55 = vpop.permute.xlu1 %2020  ;;  %v5181_v0 = vsub.f32 %v2563_v57, %v2659_v50  ;;  %v2305_v25 = vsel %vm2299_vm4, %v2272_v19, %v5102_v61 }
 0x28a   : > { %2186 = vrot.lane.b32.xlu0 %v5183_v35, %s4056_s10 }
 0x28b   : > { %6161 = vst [vmem:[#allocation21_spill] sm:$0xff] %v5181_v0  ;;  %2060 = vrot.lane.b32.xlu1 %v5185_v39, %s4055_s9  ;;  %v2849_v27 = vand.u32 4294901760, %v5181_v0 }
 0x28c   : > { %v2147_v43 = vpop.permute.xlu0 %2146 }
 0x28d   : > { %v2181_v57 = vpop.permute.xlu1 %2180  ;;  %v2469_v20 = vsel %vm2464_vm10, %v2436_v18, %v2147_v43 }
 0x28e   : > { %v2486_v26 = vsel %vm2464_vm10, %v2453_v24, %v2181_v57  ;;  %v2515_v36 = vsel %vm2498_vm11, %v2469_v20, 0  ;;  %1294 = vrot.lane.b32.xlu0 %v4954_v45, %s4049_s28  ;;  %v2338_v45 = vsel %vm2332_vm6, %v2305_v25, %v5111_v8 }
 0x28f   : > { %v2566_v15 = vsel %vm2498_vm11, %v2486_v26, 0  ;;  %2028 = vrot.lane.b32.xlu1 %v5199_v51, %s4055_s9  ;;  %v2611_v12 = vand.u32 4294901760, %v2515_v36  ;;  %v2371_v61 = vsel %vm2365_vm7, %v2338_v45, %v5120_v46 }
 0x290   : > { %v2662_v17 = vand.u32 4294901760, %v2566_v15  ;;  %v5215_v16 = vpop.permute.xlu0 %1414  ;;  %v2404_v8 = vsel %vm2398_vm8, %v2371_v61, %v5140_v62  ;;  %v5264_v61 = vld [vmem:[#allocation2 + $0x9a] sm:$0xff] }
 0x291   : > { %v5217_v59 = vpop.permute.xlu1 %1288  ;;  %v5221_v34 = vsub.f32 %v2515_v36, %v2611_v12  ;;  %v2437_v24 = vsel %vm2431_vm9, %v2404_v8, %v2021_v55 }
 0x292   : > { %v5223_v9 = vsub.f32 %v2566_v15, %v2662_v17  ;;  %2154 = vrot.lane.b32.xlu0 %v5225_v63, %s4056_s10  ;;  %v5235_v1 = vpack.c.bf16 %v2662_v17, %v2659_v50  ;;  %v2850_v50 = vsub.f32 %v5181_v0, %v2849_v27 }
 0x293   : > { %6162 = vst [vmem:[#allocation22_spill] sm:$0xff] %v5221_v34  ;;  %2188 = vrot.lane.b32.xlu1 %v5227_v23, %s4056_s10  ;;  %v2737_v26 = vand.u32 4294901760, %v5221_v34 }
 0x294   : > { %6163 = vst [vmem:[#allocation23_spill] sm:$0xff] %v5223_v9  ;;  %6164 = vst [vmem:[#allocation24_spill] sm:$0xff] %v5235_v1  ;;  %v2856_v38 = vand.u32 4294901760, %v5223_v9  ;;  %3797 = vmatprep.subr.bf16.mxu0 %v5235_v1  ;;  %3893 = vmatprep.subr.bf16.mxu1 %v5235_v1  ;;  %v5245_v46 = vpop.permute.xlu0 %1382  ;;  %v2851_v17 = vand.u32 4294901760, %v2850_v50  ;;  %v4022_v1 = vld [vmem:[#allocation2 + $0x48] sm:$0xff] }
 0x295   : > { %v2149_v43 = vpop.permute.xlu1 %2148 }
 0x296   : > { %v2470_v57 = vsel %vm2464_vm10, %v2437_v24, %v2149_v43  ;;  %v2857_v62 = vsub.f32 %v5223_v9, %v2856_v38  ;;  %1422 = vrot.lane.b32.xlu0 %v4992_v37, %s4050_s29  ;;  %v5255_v55 = vpack.c.bf16 %v2856_v38, %v2849_v27  ;;  %v5376_v9 = vld [vmem:[#allocation2 + $0x16a] sm:$0xff] }
 0x297   : > { %v2518_v20 = vsel %vm2498_vm11, %v2470_v57, 0  ;;  %1296 = vrot.lane.b32.xlu1 %v4994_v22, %s4049_s28  ;;  %v2738_v22 = vsub.f32 %v5221_v34, %v2737_v26  ;;  %v5338_v34 = vld [vmem:[#allocation2 + $0x169] sm:$0xff] }
 0x298   : > { %v2614_v11 = vand.u32 4294901760, %v2518_v20  ;;  %v2858_v36 = vand.u32 4294901760, %v2857_v62  ;;  %v1543_v15 = vpop.permute.xlu0 %1542 }
 0x299   : > { %v5258_v19 = vpop.permute.xlu1 %1416  ;;  %v2739_v43 = vand.u32 4294901760, %v2738_v22 }
 0x29a   : > { %v5260_v25 = vpack.c.bf16 %v2614_v11, %v2611_v12  ;;  %v5262_v45 = vsub.f32 %v2518_v20, %v2614_v11  ;;  %1390 = vrot.lane.b32.xlu0 %v5032_v28, %s4050_s29  ;;  %v5270_v37 = vpack.c.bf16 %v2858_v36, %v2851_v17 }
 0x29b   : > { %2156 = vrot.lane.b32.xlu1 %v5264_v61, %s4056_s10 }
 0x29c   : > { %6165 = vst [vmem:[#allocation25_spill] sm:$0xff] %v5260_v25  ;;  %6166 = vst [vmem:[#allocation26_spill] sm:$0xff] %v5262_v45  ;;  %v2744_v27 = vand.u32 4294901760, %v5262_v45  ;;  %3799 = vmatpush3.bf16.xpose.msra.mxu0 %v5260_v25  ;;  %3895 = vmatpush3.bf16.xpose.msra.mxu1 %v5260_v25  ;;  %v5278_v8 = vpop.permute.xlu0 %1510 }
 0x29d   : > { %v5280_v38 = vpop.permute.xlu1 %1384 }
 0x29e   : > { %v2745_v28 = vsub.f32 %v5262_v45, %v2744_v27  ;;  %v5283_v24 = vpack.c.bf16 %v2744_v27, %v2737_v26  ;;  %1550 = vrot.lane.b32.xlu0 %v5122_v42, %s4051_s30  ;;  %v5340_v45 = vld [vmem:[#allocation2 + $0x170] sm:$0xff] }
 0x29f   : > { %1424 = vrot.lane.b32.xlu1 %v5034_v4, %s4050_s29 }
 0x2a0   : > { %v2746_v50 = vand.u32 4294901760, %v2745_v28  ;;  %v1671_v57 = vpop.permute.xlu0 %1670  ;;  %v5323_v28 = vld [vmem:[#allocation2 + $0xa8] sm:$0xff] }
 0x2a1   : > { %v1545_v62 = vpop.permute.xlu1 %1544 }
 0x2a2   : > { %v5289_v20 = vpack.c.bf16 %v2746_v50, %v2739_v43  ;;  %1518 = vrot.lane.b32.xlu0 %v5128_v3, %s4051_s30  ;;  %v2256_v43 = vsel %vm257_vm2, %v4632_v53, %v5177_v47 }
 0x2a3   : > { %1392 = vrot.lane.b32.xlu1 %v5071_v58, %s4050_s29 }
 0x2a4   : > { %v1639_v26 = vpop.permute.xlu0 %1638 }
 0x2a5   : > { %v5295_v11 = vpop.permute.xlu1 %1512 }
 0x2a6   : > { %1678 = vrot.lane.b32.xlu0 %v5143_v41, %s4052_s6 }
 0x2a7   : > { %1552 = vrot.lane.b32.xlu1 %v5145_v60, %s4051_s30 }
 0x2a8   : > { %v1799_v4 = vpop.permute.xlu0 %1798 }
 0x2a9   : > { %v1673_v42 = vpop.permute.xlu1 %1672 }
 0x2aa   : > { %1646 = vrot.lane.b32.xlu0 %v5157_v30, %s4052_s6 }
 0x2ab   : > { %1520 = vrot.lane.b32.xlu1 %v5154_v40, %s4051_s30  ;;  %v5317_v40 = vld [vmem:[#allocation2 + $0x168] sm:$0xff] }
 0x2ac   : > { %v1767_v3 = vpop.permute.xlu0 %1766 }
 0x2ad   : > { %v5305_v36 = vpop.permute.xlu1 %1640 }
 0x2ae   : > { %1806 = vrot.lane.b32.xlu0 %v5183_v35, %s4053_s7 }
 0x2af   : > { %1680 = vrot.lane.b32.xlu1 %v5185_v39, %s4052_s6 }
 0x2b0   : > { %v1927_v58 = vpop.permute.xlu0 %1926 }
 0x2b1   : > { %v1801_v17 = vpop.permute.xlu1 %1800 }
 0x2b2   : > { %1774 = vrot.lane.b32.xlu0 %v5225_v63, %s4053_s7 }
 0x2b3   : > { %1648 = vrot.lane.b32.xlu1 %v5199_v51, %s4052_s6  ;;  %v2289_v51 = vsel %vm2266_vm5, %v2256_v43, %v5215_v16 }
 0x2b4   : > { %v1895_v60 = vpop.permute.xlu0 %1894  ;;  %v2322_v50 = vsel %vm2299_vm4, %v2289_v51, %v1543_v15  ;;  %v5350_v51 = vld [vmem:[#allocation2 + $0xa9] sm:$0xff] }
 0x2b5   : > { %v5315_v30 = vpop.permute.xlu1 %1768  ;;  %v2355_v25 = vsel %vm2332_vm6, %v2322_v50, %v1671_v57  ;;  %v5352_v50 = vld [vmem:[#allocation2 + $0xb0] sm:$0xff] }
 0x2b6   : > { %1934 = vrot.lane.b32.xlu0 %v5317_v40, %s4054_s8  ;;  %v2388_v53 = vsel %vm2365_vm7, %v2355_v25, %v1799_v4  ;;  %v2240_v25 = vsel %vm257_vm2, %v4022_v1, %v4638_v56  ;;  %v4023_v4 = vld [vmem:[#allocation2 + $0x110] sm:$0xff] }
 0x2b7   : > { %1808 = vrot.lane.b32.xlu1 %v5227_v23, %s4053_s7  ;;  %v2421_v47 = vsel %vm2398_vm8, %v2388_v53, %v1927_v58  ;;  %v2257_v0 = vsel %vm257_vm2, %v4023_v4, %v5217_v59 }
 0x2b8   : > { %v2055_v22 = vpop.permute.xlu0 %2054  ;;  %v2290_v53 = vsel %vm2266_vm5, %v2257_v0, %v5258_v19 }
 0x2b9   : > { %v1929_v27 = vpop.permute.xlu1 %1928  ;;  %v2454_v16 = vsel %vm2431_vm9, %v2421_v47, %v2055_v22  ;;  %v2273_v22 = vsel %vm2266_vm5, %v2240_v25, %v5245_v46  ;;  %v2323_v59 = vsel %vm2299_vm4, %v2290_v53, %v1545_v62  ;;  %v5378_v46 = vld [vmem:[#allocation2 + $0x171] sm:$0xff] }
 0x2ba   : > { %1902 = vrot.lane.b32.xlu0 %v5323_v28, %s4054_s8  ;;  %v2306_v56 = vsel %vm2299_vm4, %v2273_v22, %v5278_v8  ;;  %v5392_v22 = vld [vmem:[#allocation2 + $0xb1] sm:$0xff] }
 0x2bb   : > { %1776 = vrot.lane.b32.xlu1 %v5264_v61, %s4053_s7  ;;  %v4024_v53 = vld [vmem:[#allocation2 + $0x50] sm:$0xff] }
 0x2bc   : > { %v2023_v12 = vpop.permute.xlu0 %2022 }
 0x2bd   : > { %v5335_v18 = vpop.permute.xlu1 %1896 }
 0x2be   : > { %2062 = vrot.lane.b32.xlu0 %v5338_v34, %s4055_s9 }
 0x2bf   : > { %1936 = vrot.lane.b32.xlu1 %v5340_v45, %s4054_s8 }
 0x2c0   : > { %v2183_v15 = vpop.permute.xlu0 %2182 }
 0x2c1   : > { %v2057_v43 = vpop.permute.xlu1 %2056  ;;  %v2487_v57 = vsel %vm2464_vm10, %v2454_v16, %v2183_v15  ;;  %v2339_v15 = vsel %vm2332_vm6, %v2306_v56, %v1639_v26  ;;  %v2241_v56 = vsel %vm257_vm2, %v4024_v53, %v4656_v6 }
 0x2c2   : > { %v2569_v58 = vsel %vm2498_vm11, %v2487_v57, 0  ;;  %2030 = vrot.lane.b32.xlu0 %v5350_v51, %s4055_s9  ;;  %v2356_v57 = vsel %vm2332_vm6, %v2323_v59, %v1673_v42  ;;  %v2372_v0 = vsel %vm2365_vm7, %v2339_v15, %v1767_v3 }
 0x2c3   : > { %1904 = vrot.lane.b32.xlu1 %v5352_v50, %s4054_s8  ;;  %v2665_v47 = vand.u32 4294901760, %v2569_v58  ;;  %v2389_v19 = vsel %vm2365_vm7, %v2356_v57, %v1801_v17  ;;  %v2405_v8 = vsel %vm2398_vm8, %v2372_v0, %v1895_v60 }
 0x2c4   : > { %v5370_v1 = vpop.permute.xlu0 %1290  ;;  %v2422_v62 = vsel %vm2398_vm8, %v2389_v19, %v1929_v27  ;;  %v2438_v26 = vsel %vm2431_vm9, %v2405_v8, %v2023_v12  ;;  %v2274_v12 = vsel %vm2266_vm5, %v2241_v56, %v5280_v38  ;;  %v5419_v38 = vld [vmem:[#allocation2 + $0x172] sm:$0xff] }
 0x2c5   : > { %v2025_v16 = vpop.permute.xlu1 %2024  ;;  %v5374_v4 = vsub.f32 %v2569_v58, %v2665_v47  ;;  %v2455_v42 = vsel %vm2431_vm9, %v2422_v62, %v2057_v43  ;;  %v2307_v15 = vsel %vm2299_vm4, %v2274_v12, %v5295_v11  ;;  %v5417_v62 = vld [vmem:[#allocation2 + $0xaa] sm:$0xff] }
 0x2c6   : > { %2190 = vrot.lane.b32.xlu0 %v5376_v9, %s4056_s10 }
 0x2c7   : > { %6167 = vst [vmem:[#allocation27_spill] sm:$0xff] %v5374_v4  ;;  %2064 = vrot.lane.b32.xlu1 %v5378_v46, %s4055_s9  ;;  %v2863_v6 = vand.u32 4294901760, %v5374_v4 }
 0x2c8   : > { %v2151_v25 = vpop.permute.xlu0 %2150 }
 0x2c9   : > { %v2185_v58 = vpop.permute.xlu1 %2184  ;;  %v2471_v3 = vsel %vm2464_vm10, %v2438_v26, %v2151_v25 }
 0x2ca   : > { %v2488_v17 = vsel %vm2464_vm10, %v2455_v42, %v2185_v58  ;;  %v2521_v60 = vsel %vm2498_vm11, %v2471_v3, 0  ;;  %1298 = vrot.lane.b32.xlu0 %v5143_v41, %s4049_s28  ;;  %v2340_v41 = vsel %vm2332_vm6, %v2307_v15, %v5305_v36 }
 0x2cb   : > { %v2572_v27 = vsel %vm2498_vm11, %v2488_v17, 0  ;;  %2032 = vrot.lane.b32.xlu1 %v5392_v22, %s4055_s9  ;;  %v2617_v43 = vand.u32 4294901760, %v2521_v60  ;;  %v2373_v11 = vsel %vm2365_vm7, %v2340_v41, %v5315_v30 }
 0x2cc   : > { %v2668_v59 = vand.u32 4294901760, %v2572_v27  ;;  %v5407_v57 = vpop.permute.xlu0 %1418  ;;  %v2406_v36 = vsel %vm2398_vm8, %v2373_v11, %v5335_v18 }
 0x2cd   : > { %v5409_v0 = vpop.permute.xlu1 %1292  ;;  %v5413_v19 = vsub.f32 %v2521_v60, %v2617_v43  ;;  %v2439_v58 = vsel %vm2431_vm9, %v2406_v36, %v2025_v16  ;;  %v5456_v36 = vld [vmem:[#allocation2 + $0xb2] sm:$0xff] }
 0x2ce   : > { %v5415_v8 = vsub.f32 %v2572_v27, %v2668_v59  ;;  %2158 = vrot.lane.b32.xlu0 %v5417_v62, %s4056_s10  ;;  %v5427_v26 = vpack.c.bf16 %v2668_v59, %v2665_v47  ;;  %v2864_v47 = vsub.f32 %v5374_v4, %v2863_v6  ;;  %v5531_v4 = vld [vmem:[#allocation2 + $0x188] sm:$0xff] }
 0x2cf   : > { %6168 = vst [vmem:[#allocation28_spill] sm:$0xff] %v5413_v19  ;;  %2192 = vrot.lane.b32.xlu1 %v5419_v38, %s4056_s10  ;;  %v2751_v56 = vand.u32 4294901760, %v5413_v19 }
 0x2d0   : > { %6169 = vst [vmem:[#allocation29_spill] sm:$0xff] %v5415_v8  ;;  %6170 = vst [vmem:[#allocation30_spill] sm:$0xff] %v5427_v26  ;;  %v2870_v42 = vand.u32 4294901760, %v5415_v8  ;;  %3801 = vmatprep.subr.bf16.mxu0 %v5427_v26  ;;  %3897 = vmatprep.subr.bf16.mxu1 %v5427_v26  ;;  %v5437_v30 = vpop.permute.xlu0 %1386  ;;  %v2865_v15 = vand.u32 4294901760, %v2864_v47  ;;  %v5529_v26 = vld [vmem:[#allocation2 + $0x181] sm:$0xff] }
 0x2d1   : > { %v2153_v3 = vpop.permute.xlu1 %2152 }
 0x2d2   : > { %v2472_v17 = vsel %vm2464_vm10, %v2439_v58, %v2153_v3  ;;  %v2871_v18 = vsub.f32 %v5415_v8, %v2870_v42  ;;  %1426 = vrot.lane.b32.xlu0 %v5183_v35, %s4050_s29  ;;  %v5447_v16 = vpack.c.bf16 %v2870_v42, %v2863_v6  ;;  %v4026_v8 = vld [vmem:[#allocation2 + $0x60] sm:$0xff] }
 0x2d3   : > { %v2524_v53 = vsel %vm2498_vm11, %v2472_v17, 0  ;;  %1300 = vrot.lane.b32.xlu1 %v5185_v39, %s4049_s28  ;;  %v2752_v39 = vsub.f32 %v5413_v19, %v2751_v56 }
 0x2d4   : > { %v2620_v60 = vand.u32 4294901760, %v2524_v53  ;;  %v2872_v27 = vand.u32 4294901760, %v2871_v18  ;;  %v1547_v12 = vpop.permute.xlu0 %1546 }
 0x2d5   : > { %v5450_v59 = vpop.permute.xlu1 %1420  ;;  %v2753_v47 = vand.u32 4294901760, %v2752_v39 }
 0x2d6   : > { %v5452_v41 = vpack.c.bf16 %v2620_v60, %v2617_v43  ;;  %v5454_v11 = vsub.f32 %v2524_v53, %v2620_v60  ;;  %1394 = vrot.lane.b32.xlu0 %v5225_v63, %s4050_s29  ;;  %v5462_v35 = vpack.c.bf16 %v2872_v27, %v2865_v15 }
 0x2d7   : > { %2160 = vrot.lane.b32.xlu1 %v5456_v36, %s4056_s10 }
 0x2d8   : > { %6171 = vst [vmem:[#allocation31_spill] sm:$0xff] %v5452_v41  ;;  %6172 = vst [vmem:[#allocation32_spill] sm:$0xff] %v5454_v11  ;;  %v2758_v6 = vand.u32 4294901760, %v5454_v11  ;;  %3803 = vmatpush3.bf16.xpose.msra.mxu0 %v5452_v41  ;;  %3899 = vmatpush3.bf16.xpose.msra.mxu1 %v5452_v41  ;;  %v5470_v42 = vpop.permute.xlu0 %1514 }
 0x2d9   : > { %v5472_v58 = vpop.permute.xlu1 %1388 }
 0x2da   : > { %v2759_v63 = vsub.f32 %v5454_v11, %v2758_v6  ;;  %v5475_v3 = vpack.c.bf16 %v2758_v6, %v2751_v56  ;;  %1554 = vrot.lane.b32.xlu0 %v5317_v40, %s4051_s30 }
 0x2db   : > { %1428 = vrot.lane.b32.xlu1 %v5227_v23, %s4050_s29 }
 0x2dc   : > { %v2760_v17 = vand.u32 4294901760, %v2759_v63  ;;  %v1675_v18 = vpop.permute.xlu0 %1674 }
 0x2dd   : > { %v1549_v53 = vpop.permute.xlu1 %1548 }
 0x2de   : > { %v5481_v60 = vpack.c.bf16 %v2760_v17, %v2753_v47  ;;  %1522 = vrot.lane.b32.xlu0 %v5323_v28, %s4051_s30  ;;  %v5515_v47 = vld [vmem:[#allocation2 + $0xc0] sm:$0xff] }
 0x2df   : > { %1396 = vrot.lane.b32.xlu1 %v5264_v61, %s4050_s29  ;;  %v4025_v17 = vld [vmem:[#allocation2 + $0x120] sm:$0xff] }
 0x2e0   : > { %v1643_v56 = vpop.permute.xlu0 %1642  ;;  %v2258_v43 = vsel %vm257_vm2, %v4025_v17, %v5370_v1 }
 0x2e1   : > { %v5487_v27 = vpop.permute.xlu1 %1516 }
 0x2e2   : > { %1682 = vrot.lane.b32.xlu0 %v5338_v34, %s4052_s6 }
 0x2e3   : > { %1556 = vrot.lane.b32.xlu1 %v5340_v45, %s4051_s30 }
 0x2e4   : > { %v1803_v23 = vpop.permute.xlu0 %1802 }
 0x2e5   : > { %v1677_v40 = vpop.permute.xlu1 %1676 }
 0x2e6   : > { %1650 = vrot.lane.b32.xlu0 %v5350_v51, %s4052_s6 }
 0x2e7   : > { %1524 = vrot.lane.b32.xlu1 %v5352_v50, %s4051_s30  ;;  %v5509_v50 = vld [vmem:[#allocation2 + $0x180] sm:$0xff] }
 0x2e8   : > { %v1771_v28 = vpop.permute.xlu0 %1770 }
 0x2e9   : > { %v5497_v15 = vpop.permute.xlu1 %1644 }
 0x2ea   : > { %1810 = vrot.lane.b32.xlu0 %v5376_v9, %s4053_s7 }
 0x2eb   : > { %1684 = vrot.lane.b32.xlu1 %v5378_v46, %s4052_s6 }
 0x2ec   : > { %v1931_v61 = vpop.permute.xlu0 %1930 }
 0x2ed   : > { %v1805_v39 = vpop.permute.xlu1 %1804 }
 0x2ee   : > { %1778 = vrot.lane.b32.xlu0 %v5417_v62, %s4053_s7 }
 0x2ef   : > { %1652 = vrot.lane.b32.xlu1 %v5392_v22, %s4052_s6  ;;  %v2291_v22 = vsel %vm2266_vm5, %v2258_v43, %v5407_v57 }
 0x2f0   : > { %v1899_v45 = vpop.permute.xlu0 %1898  ;;  %v2324_v25 = vsel %vm2299_vm4, %v2291_v22, %v1547_v12  ;;  %v5543_v22 = vld [vmem:[#allocation2 + $0xc8] sm:$0xff] }
 0x2f1   : > { %v5507_v51 = vpop.permute.xlu1 %1772  ;;  %v2357_v11 = vsel %vm2332_vm6, %v2324_v25, %v1675_v18  ;;  %v5541_v18 = vld [vmem:[#allocation2 + $0xc1] sm:$0xff] }
 0x2f2   : > { %1938 = vrot.lane.b32.xlu0 %v5509_v50, %s4054_s8  ;;  %v2390_v1 = vsel %vm2365_vm7, %v2357_v11, %v1803_v23  ;;  %v2242_v11 = vsel %vm257_vm2, %v4026_v8, %v4645_v10  ;;  %v4027_v23 = vld [vmem:[#allocation2 + $0x128] sm:$0xff] }
 0x2f3   : > { %1812 = vrot.lane.b32.xlu1 %v5419_v38, %s4053_s7  ;;  %v2423_v57 = vsel %vm2398_vm8, %v2390_v1, %v1931_v61  ;;  %v2259_v31 = vsel %vm257_vm2, %v4027_v23, %v5409_v0 }
 0x2f4   : > { %v2059_v6 = vpop.permute.xlu0 %2058  ;;  %v2292_v1 = vsel %vm2266_vm5, %v2259_v31, %v5450_v59 }
 0x2f5   : > { %v1933_v63 = vpop.permute.xlu1 %1932  ;;  %v2456_v12 = vsel %vm2431_vm9, %v2423_v57, %v2059_v6  ;;  %v2275_v6 = vsel %vm2266_vm5, %v2242_v11, %v5437_v30  ;;  %v2325_v0 = vsel %vm2299_vm4, %v2292_v1, %v1549_v53  ;;  %v5569_v30 = vld [vmem:[#allocation2 + $0x189] sm:$0xff] }
 0x2f6   : > { %1906 = vrot.lane.b32.xlu0 %v5515_v47, %s4054_s8  ;;  %v2308_v10 = vsel %vm2299_vm4, %v2275_v6, %v5470_v42  ;;  %v5583_v6 = vld [vmem:[#allocation2 + $0xc9] sm:$0xff] }
 0x2f7   : > { %1780 = vrot.lane.b32.xlu1 %v5456_v36, %s4053_s7  ;;  %v4028_v1 = vld [vmem:[#allocation2 + $0x68] sm:$0xff] }
 0x2f8   : > { %v2027_v41 = vpop.permute.xlu0 %2026 }
 0x2f9   : > { %v5526_v19 = vpop.permute.xlu1 %1900 }
 0x2fa   : > { %2066 = vrot.lane.b32.xlu0 %v5529_v26, %s4055_s9 }
 0x2fb   : > { %1940 = vrot.lane.b32.xlu1 %v5531_v4, %s4054_s8 }
 0x2fc   : > { %v2187_v43 = vpop.permute.xlu0 %2186 }
 0x2fd   : > { %v2061_v17 = vpop.permute.xlu1 %2060  ;;  %v2489_v25 = vsel %vm2464_vm10, %v2456_v12, %v2187_v43  ;;  %v2341_v43 = vsel %vm2332_vm6, %v2308_v10, %v1643_v56  ;;  %v2243_v10 = vsel %vm257_vm2, %v4028_v1, %v4663_v7 }
 0x2fe   : > { %v2575_v61 = vsel %vm2498_vm11, %v2489_v25, 0  ;;  %2034 = vrot.lane.b32.xlu0 %v5541_v18, %s4055_s9  ;;  %v2358_v25 = vsel %vm2332_vm6, %v2325_v0, %v1677_v40  ;;  %v2374_v31 = vsel %vm2365_vm7, %v2341_v43, %v1771_v28 }
 0x2ff   : > { %1908 = vrot.lane.b32.xlu1 %v5543_v22, %s4054_s8  ;;  %v2671_v57 = vand.u32 4294901760, %v2575_v61  ;;  %v2391_v59 = vsel %vm2365_vm7, %v2358_v25, %v1805_v39  ;;  %v2407_v42 = vsel %vm2398_vm8, %v2374_v31, %v1899_v45 }
 0x300   : > { %v5561_v8 = vpop.permute.xlu0 %1294  ;;  %v2424_v53 = vsel %vm2398_vm8, %v2391_v59, %v1933_v63  ;;  %v2440_v56 = vsel %vm2431_vm9, %v2407_v42, %v2027_v41  ;;  %v2276_v41 = vsel %vm2266_vm5, %v2243_v10, %v5472_v58  ;;  %v5610_v58 = vld [vmem:[#allocation2 + $0x18a] sm:$0xff] }
 0x301   : > { %v2029_v12 = vpop.permute.xlu1 %2028  ;;  %v5565_v23 = vsub.f32 %v2575_v61, %v2671_v57  ;;  %v2457_v40 = vsel %vm2431_vm9, %v2424_v53, %v2061_v17  ;;  %v2309_v43 = vsel %vm2299_vm4, %v2276_v41, %v5487_v27  ;;  %v5608_v53 = vld [vmem:[#allocation2 + $0xc2] sm:$0xff] }
 0x302   : > { %2194 = vrot.lane.b32.xlu0 %v5567_v2, %s4056_s10 }
 0x303   : > { %6173 = vst [vmem:[#allocation33_spill] sm:$0xff] %v5565_v23  ;;  %2068 = vrot.lane.b32.xlu1 %v5569_v30, %s4055_s9  ;;  %v2877_v7 = vand.u32 4294901760, %v5565_v23 }
 0x304   : > { %v2155_v11 = vpop.permute.xlu0 %2154 }
 0x305   : > { %v2189_v61 = vpop.permute.xlu1 %2188  ;;  %v2473_v28 = vsel %vm2464_vm10, %v2440_v56, %v2155_v11 }
 0x306   : > { %v2490_v39 = vsel %vm2464_vm10, %v2457_v40, %v2189_v61  ;;  %v2527_v45 = vsel %vm2498_vm11, %v2473_v28, 0  ;;  %1302 = vrot.lane.b32.xlu0 %v5338_v34, %s4049_s28  ;;  %v2342_v34 = vsel %vm2332_vm6, %v2309_v43, %v5497_v15 }
 0x307   : > { %v2578_v63 = vsel %vm2498_vm11, %v2490_v39, 0  ;;  %2036 = vrot.lane.b32.xlu1 %v5583_v6, %s4055_s9  ;;  %v2623_v17 = vand.u32 4294901760, %v2527_v45  ;;  %v2375_v27 = vsel %vm2365_vm7, %v2342_v34, %v5507_v51 }
 0x308   : > { %v2674_v0 = vand.u32 4294901760, %v2578_v63  ;;  %v5598_v25 = vpop.permute.xlu0 %1422  ;;  %v2408_v15 = vsel %vm2398_vm8, %v2375_v27, %v5526_v19 }
 0x309   : > { %v5600_v31 = vpop.permute.xlu1 %1296  ;;  %v5604_v59 = vsub.f32 %v2527_v45, %v2623_v17  ;;  %v2441_v61 = vsel %vm2431_vm9, %v2408_v15, %v2029_v12  ;;  %v1191_v15 = vld [vmem:[#allocation2 + $0xca] sm:$0xff] }
 0x30a   : > { %v5606_v42 = vsub.f32 %v2578_v63, %v2674_v0  ;;  %2162 = vrot.lane.b32.xlu0 %v5608_v53, %s4056_s10  ;;  %v5618_v56 = vpack.c.bf16 %v2674_v0, %v2671_v57  ;;  %v2878_v57 = vsub.f32 %v5565_v23, %v2877_v7 }
 0x30b   : > { %6174 = vst [vmem:[#allocation34_spill] sm:$0xff] %v5604_v59  ;;  %2196 = vrot.lane.b32.xlu1 %v5610_v58, %s4056_s10  ;;  %v2765_v10 = vand.u32 4294901760, %v5604_v59 }
 0x30c   : > { %6175 = vst [vmem:[#allocation35_spill] sm:$0xff] %v5606_v42  ;;  %6176 = vst [vmem:[#allocation36_spill] sm:$0xff] %v5618_v56  ;;  %v2884_v40 = vand.u32 4294901760, %v5606_v42  ;;  %3805 = vmatprep.subr.bf16.mxu0 %v5618_v56  ;;  %3901 = vmatprep.subr.bf16.mxu1 %v5618_v56  ;;  %v5628_v51 = vpop.permute.xlu0 %1390  ;;  %v2879_v43 = vand.u32 4294901760, %v2878_v57 }
 0x30d   : > { %v2157_v28 = vpop.permute.xlu1 %2156 }
 0x30e   : > { %v2474_v39 = vsel %vm2464_vm10, %v2441_v61, %v2157_v28  ;;  %v2885_v19 = vsub.f32 %v5606_v42, %v2884_v40  ;;  %1430 = vrot.lane.b32.xlu0 %v5376_v9, %s4050_s29  ;;  %v5638_v12 = vpack.c.bf16 %v2884_v40, %v2877_v7 }
 0x30f   : > { %v2530_v1 = vsel %vm2498_vm11, %v2474_v39, 0  ;;  %1304 = vrot.lane.b32.xlu1 %v5378_v46, %s4049_s28  ;;  %v2766_v46 = vsub.f32 %v5604_v59, %v2765_v10 }
 0x310   : > { %v2626_v45 = vand.u32 4294901760, %v2530_v1  ;;  %v2886_v63 = vand.u32 4294901760, %v2885_v19  ;;  %v1551_v41 = vpop.permute.xlu0 %1550 }
 0x311   : > { %v5641_v0 = vpop.permute.xlu1 %1424  ;;  %v2767_v57 = vand.u32 4294901760, %v2766_v46 }
 0x312   : > { %v5643_v34 = vpack.c.bf16 %v2626_v45, %v2623_v17  ;;  %v5645_v27 = vsub.f32 %v2530_v1, %v2626_v45  ;;  %1398 = vrot.lane.b32.xlu0 %v5417_v62, %s4050_s29  ;;  %v5650_v9 = vpack.c.bf16 %v2886_v63, %v2879_v43 }
 0x313   : > { %2164 = vrot.lane.b32.xlu1 %v1191_v15, %s4056_s10 }
 0x314   : > { %6177 = vst [vmem:[#allocation37_spill] sm:$0xff] %v5643_v34  ;;  %6178 = vst [vmem:[#allocation38_spill] sm:$0xff] %v5645_v27  ;;  %v2772_v7 = vand.u32 4294901760, %v5645_v27  ;;  %3807 = vmatpush3.bf16.xpose.msra.mxu0 %v5643_v34  ;;  %3903 = vmatpush3.bf16.xpose.msra.mxu1 %v5643_v34  ;;  %v5658_v40 = vpop.permute.xlu0 %1518  ;;  %v6179_v34 = vld [vmem:[#allocation3_spill] sm:$0xff] }
 0x315   : > { %v5660_v61 = vpop.permute.xlu1 %1392 }
 0x316   : > { %v2773_v62 = vsub.f32 %v5645_v27, %v2772_v7  ;;  %v5663_v28 = vpack.c.bf16 %v2772_v7, %v2765_v10  ;;  %1558 = vrot.lane.b32.xlu0 %v5509_v50, %s4051_s30  ;;  %v4029_v7 = vld [vmem:[#allocation2 + $0x138] sm:$0xff] }
 0x317   : > { %1432 = vrot.lane.b32.xlu1 %v5419_v38, %s4050_s29 }
 0x318   : > { %v2774_v39 = vand.u32 4294901760, %v2773_v62  ;;  %v1679_v19 = vpop.permute.xlu0 %1678  ;;  %v2260_v62 = vsel %vm257_vm2, %v4029_v7, %v5561_v8 }
 0x319   : > { %v5669_v1 = vpop.permute.xlu1 %1552 }
 0x31a   : > { %v5671_v45 = vpack.c.bf16 %v2774_v39, %v2767_v57  ;;  %1526 = vrot.lane.b32.xlu0 %v5515_v47, %s4051_s30  ;;  %v1145_v57 = vld [vmem:[#allocation2 + $0x1a0] sm:$0xff] }
 0x31b   : > { %1400 = vrot.lane.b32.xlu1 %v5456_v36, %s4050_s29 }
 0x31c   : > { %v1647_v10 = vpop.permute.xlu0 %1646 }
 0x31d   : > { %v5677_v63 = vpop.permute.xlu1 %1520 }
 0x31e   : > { %1686 = vrot.lane.b32.xlu0 %v5529_v26, %s4052_s6 }
 0x31f   : > { %1560 = vrot.lane.b32.xlu1 %v5531_v4, %s4051_s30  ;;  %v1144_v4 = vld [vmem:[#allocation2 + $0x198] sm:$0xff] }
 0x320   : > { %v1807_v38 = vpop.permute.xlu0 %1806 }
 0x321   : > { %v1681_v50 = vpop.permute.xlu1 %1680 }
 0x322   : > { %1654 = vrot.lane.b32.xlu0 %v5541_v18, %s4052_s6 }
 0x323   : > { %1528 = vrot.lane.b32.xlu1 %v5543_v22, %s4051_s30 }
 0x324   : > { %v1775_v47 = vpop.permute.xlu0 %1774 }
 0x325   : > { %v5687_v43 = vpop.permute.xlu1 %1648 }
 0x326   : > { %1814 = vrot.lane.b32.xlu0 %v5567_v2, %s4053_s7 }
 0x327   : > { %1688 = vrot.lane.b32.xlu1 %v5569_v30, %s4052_s6  ;;  %v1128_v30 = vld [vmem:[#allocation2 + $0xd8] sm:$0xff] }
 0x328   : > { %v1935_v26 = vpop.permute.xlu0 %1934 }
 0x329   : > { %v1809_v36 = vpop.permute.xlu1 %1808 }
 0x32a   : > { %1782 = vrot.lane.b32.xlu0 %v5608_v53, %s4053_s7  ;;  %v1176_v53 = vld [vmem:[#allocation2 + $0x199] sm:$0xff] }
 0x32b   : > { %1656 = vrot.lane.b32.xlu1 %v5583_v6, %s4052_s6  ;;  %v2293_v6 = vsel %vm2266_vm5, %v2260_v62, %v5598_v25  ;;  %v1129_v62 = vld [vmem:[#allocation2 + $0xe0] sm:$0xff] }
 0x32c   : > { %v1903_v18 = vpop.permute.xlu0 %1902  ;;  %v2326_v39 = vsel %vm2299_vm4, %v2293_v6, %v1551_v41  ;;  %v1160_v41 = vld [vmem:[#allocation2 + $0xd9] sm:$0xff] }
 0x32d   : > { %v5697_v22 = vpop.permute.xlu1 %1776  ;;  %v2359_v17 = vsel %vm2332_vm6, %v2326_v39, %v1679_v19  ;;  %v4030_v6 = vld [vmem:[#allocation2 + $0x78] sm:$0xff]  ;;  %v4031_v39 = vld [vmem:[#allocation2 + $0x140] sm:$0xff] }
 0x32e   : > { %1942 = vrot.lane.b32.xlu0 %v1144_v4, %s4054_s8  ;;  %v2392_v11 = vsel %vm2365_vm7, %v2359_v17, %v1807_v38  ;;  %v2244_v19 = vsel %vm257_vm2, %v4030_v6, %v6179_v34  ;;  %v2261_v17 = vsel %vm257_vm2, %v4031_v39, %v5600_v31  ;;  %v1192_v39 = vld [vmem:[#allocation2 + $0xda] sm:$0xff] }
 0x32f   : > { %1816 = vrot.lane.b32.xlu1 %v5610_v58, %s4053_s7  ;;  %v2425_v8 = vsel %vm2398_vm8, %v2392_v11, %v1935_v26  ;;  %v2277_v11 = vsel %vm2266_vm5, %v2244_v19, %v5628_v51  ;;  %v2294_v26 = vsel %vm2266_vm5, %v2261_v17, %v5641_v0  ;;  %v4032_v17 = vld [vmem:[#allocation2 + $0x80] sm:$0xff] }
 0x330   : > { %v2063_v2 = vpop.permute.xlu0 %2062  ;;  %v2310_v34 = vsel %vm2299_vm4, %v2277_v11, %v5658_v40  ;;  %v2327_v31 = vsel %vm2299_vm4, %v2294_v26, %v5669_v1 }
 0x331   : > { %v1937_v46 = vpop.permute.xlu1 %1936 }
 0x332   : > { %1910 = vrot.lane.b32.xlu0 %v1128_v30, %s4054_s8 }
 0x333   : > { %1784 = vrot.lane.b32.xlu1 %v1191_v15, %s4053_s7  ;;  %v2458_v15 = vsel %vm2431_vm9, %v2425_v8, %v2063_v2 }
 0x334   : > { %v2031_v4 = vpop.permute.xlu0 %2030 }
 0x335   : > { %v5709_v58 = vpop.permute.xlu1 %1904 }
 0x336   : > { %2070 = vrot.lane.b32.xlu0 %v1176_v53, %s4055_s9  ;;  %v1208_v53 = vld [vmem:[#allocation2 + $0x19a] sm:$0xff] }
 0x337   : > { %1944 = vrot.lane.b32.xlu1 %v1145_v57, %s4054_s8  ;;  %v1177_v57 = vld [vmem:[#allocation2 + $0x1a1] sm:$0xff] }
 0x338   : > { %v2191_v25 = vpop.permute.xlu0 %2190 }
 0x339   : > { %v2065_v30 = vpop.permute.xlu1 %2064  ;;  %v2491_v7 = vsel %vm2464_vm10, %v2458_v15, %v2191_v25  ;;  %v2343_v25 = vsel %vm2332_vm6, %v2310_v34, %v1647_v10 }
 0x33a   : > { %v2581_v38 = vsel %vm2498_vm11, %v2491_v7, 0  ;;  %2038 = vrot.lane.b32.xlu0 %v1160_v41, %s4055_s9  ;;  %v2360_v7 = vsel %vm2332_vm6, %v2327_v31, %v1681_v50  ;;  %v2376_v0 = vsel %vm2365_vm7, %v2343_v25, %v1775_v47 }
 0x33b   : > { %1912 = vrot.lane.b32.xlu1 %v1129_v62, %s4054_s8  ;;  %v2677_v2 = vand.u32 4294901760, %v2581_v38  ;;  %v2393_v41 = vsel %vm2365_vm7, %v2360_v7, %v1809_v36  ;;  %v2409_v40 = vsel %vm2398_vm8, %v2376_v0, %v1903_v18  ;;  %v1161_v36 = vld [vmem:[#allocation2 + $0xe1] sm:$0xff] }
 0x33c   : > { %v5733_v8 = vpop.permute.xlu0 %1298  ;;  %v2426_v1 = vsel %vm2398_vm8, %v2393_v41, %v1937_v46  ;;  %v2442_v62 = vsel %vm2431_vm9, %v2409_v40, %v2031_v4 }
 0x33d   : > { %v2033_v15 = vpop.permute.xlu1 %2032  ;;  %v5737_v51 = vsub.f32 %v2581_v38, %v2677_v2  ;;  %v2459_v10 = vsel %vm2431_vm9, %v2426_v1, %v2065_v30  ;;  %v6181_v38 = vld [vmem:[#allocation6_spill] sm:$0xff] }
 0x33e   : > { %2198 = vrot.lane.b32.xlu0 %v1208_v53, %s4056_s10  ;;  %v2245_v11 = vsel %vm257_vm2, %v4032_v17, %v6181_v38  ;;  %v1209_v53 = vld [vmem:[#allocation2 + $0x1a2] sm:$0xff] }
 0x33f   : > { %6180 = vst [vmem:[#allocation3_spill] sm:$0xff] %v5737_v51  ;;  %2072 = vrot.lane.b32.xlu1 %v1177_v57, %s4055_s9  ;;  %v2278_v4 = vsel %vm2266_vm5, %v2245_v11, %v5660_v61  ;;  %v2891_v34 = vand.u32 4294901760, %v5737_v51 }
 0x340   : > { %v2159_v6 = vpop.permute.xlu0 %2158  ;;  %v2311_v57 = vsel %vm2299_vm4, %v2278_v4, %v5677_v63 }
 0x341   : > { %v2193_v50 = vpop.permute.xlu1 %2192  ;;  %v2475_v19 = vsel %vm2464_vm10, %v2442_v62, %v2159_v6  ;;  %v2344_v7 = vsel %vm2332_vm6, %v2311_v57, %v5687_v43  ;;  %v2497_v43 = vld [vmem:[%s6095_s2] sm:$0xf]  ;;  %v2892_v6 = vsub.f32 %v5737_v51, %v2891_v34 }
 0x342   : > { %v2492_v47 = vsel %vm2464_vm10, %v2459_v10, %v2193_v50  ;;  %v2533_v18 = vsel %vm2498_vm11, %v2475_v19, 0  ;;  %2166 = vrot.lane.b32.xlu0 %v1192_v39, %s4056_s10  ;;  %v2377_v61 = vsel %vm2365_vm7, %v2344_v7, %v5697_v22  ;;  %v1193_v19 = vld [vmem:[#allocation2 + $0xe2] sm:$0xff] }
 0x343   : > { %v2584_v46 = vsel %vm2498_vm11, %v2492_v47, 0  ;;  %2040 = vrot.lane.b32.xlu1 %v1161_v36, %s4055_s9  ;;  %v2629_v30 = vand.u32 4294901760, %v2533_v18  ;;  %v2410_v63 = vsel %vm2398_vm8, %v2377_v61, %v5709_v58  ;;  %v2500_v58 = vsel %vm2498_vm11, %v2497_v43, 0 }
 0x344   : > { %v2680_v26 = vand.u32 4294901760, %v2584_v46  ;;  %v5760_v31 = vpop.permute.xlu0 %1426  ;;  %v2443_v10 = vsel %vm2431_vm9, %v2410_v63, %v2033_v15  ;;  %v5791_v47 = vand.u32 4294901760, %v2500_v58  ;;  %v2893_v4 = vand.u32 4294901760, %v2892_v6 }
 0x345   : > { %v5762_v25 = vpop.permute.xlu1 %1300  ;;  %v5766_v0 = vsub.f32 %v2533_v18, %v2629_v30 }
 0x346   : > { %v5768_v41 = vsub.f32 %v2584_v46, %v2680_v26  ;;  %v5773_v40 = vpack.c.bf16 %v2680_v26, %v2677_v2  ;;  %v5800_v11 = vsub.f32 %v2500_v58, %v5791_v47 }
 0x347   : > { %6182 = vst [vmem:[#allocation6_spill] sm:$0xff] %v5766_v0  ;;  %2200 = vrot.lane.b32.xlu1 %v1209_v53, %s4056_s10  ;;  %v2779_v17 = vand.u32 4294901760, %v5766_v0 }
 0x348   : > { %6183 = vst [vmem:[#allocation39_spill] sm:$0xff] %v5768_v41  ;;  %6184 = vst [vmem:[#allocation40_spill] sm:$0xff] %v5773_v40  ;;  %v2898_v1 = vand.u32 4294901760, %v5768_v41  ;;  %3809 = vmatprep.subr.bf16.mxu0 %v5773_v40  ;;  %3905 = vmatprep.subr.bf16.mxu1 %v5773_v40  ;;  %v5786_v22 = vpop.permute.xlu0 %1394  ;;  %v5807_v7 = vand.u32 4294901760, %v5800_v11 }
 0x349   : > { %v2161_v2 = vpop.permute.xlu1 %2160  ;;  %6185 = vst [vmem:[#allocation41_spill] sm:$0xff] %v5800_v11 }
 0x34a   : > { %v2476_v50 = vsel %vm2464_vm10, %v2443_v10, %v2161_v2  ;;  %v2899_v15 = vsub.f32 %v5768_v41, %v2898_v1  ;;  %v5796_v36 = vpack.c.bf16 %v2898_v1, %v2891_v34  ;;  %v2780_v34 = vsub.f32 %v5766_v0, %v2779_v17  ;;  %3688 = vmatprep.mubr.f32.mxu1 %v5807_v7 }
 0x34b   : > { %v2536_v39 = vsel %vm2498_vm11, %v2476_v50, 0  ;;  %2168 = vrot.lane.b32.xlu1 %v1193_v19, %s4056_s10  ;;  %v2698_v10 = vsub.f32 %v5800_v11, %v5807_v7 }
 0x34c   : > { %v2632_v38 = vand.u32 4294901760, %v2536_v39  ;;  %v1555_v18 = vpop.permute.xlu0 %1554  ;;  %v2900_v26 = vand.u32 4294901760, %v2899_v15  ;;  %v2781_v50 = vand.u32 4294901760, %v2780_v34  ;;  %v4033_v34 = vld [vmem:[#allocation2 + $0x150] sm:$0xff] }
 0x34d   : > { %v1429_v46 = vpop.permute.xlu1 %1428  ;;  %v5825_v6 = vand.u32 4294901760, %v2698_v10 }
 0x34e   : > { %v5802_v53 = vpack.c.bf16 %v2632_v38, %v2629_v30  ;;  %v5804_v57 = vsub.f32 %v2536_v39, %v2632_v38  ;;  %v5809_v61 = vpack.c.bf16 %v2900_v26, %v2893_v4 }
 0x34f   : > { %3586 = vmatprep.mubr.f32.mxu0 %v5825_v6 }
 0x350   : > { %6186 = vst [vmem:[#allocation42_spill] sm:$0xff] %v5802_v53  ;;  %6187 = vst [vmem:[#allocation43_spill] sm:$0xff] %v5804_v57  ;;  %v2786_v63 = vand.u32 4294901760, %v5804_v57  ;;  %3811 = vmatpush3.bf16.xpose.msra.mxu0 %v5802_v53  ;;  %3907 = vmatpush3.bf16.xpose.msra.mxu1 %v5802_v53  ;;  %v1523_v30 = vpop.permute.xlu0 %1522 }
 0x351   : > { %v5817_v43 = vpop.permute.xlu1 %1396 }
 0x352   : > { %v2787_v2 = vsub.f32 %v5804_v57, %v2786_v63  ;;  %v5823_v58 = vpack.c.bf16 %v2786_v63, %v2779_v17 }
 0x354   : > { %v2788_v19 = vand.u32 4294901760, %v2787_v2  ;;  %v1683_v39 = vpop.permute.xlu0 %1682  ;;  %v2262_v2 = vsel %vm257_vm2, %v4033_v34, %v5733_v8  ;;  %v4034_v8 = vld [vmem:[#allocation2 + $0x90] sm:$0xff]  ;;  %v6188_v34 = vld [vmem:[#allocation4_spill] sm:$0xff] }
 0x355   : > { %v1557_v15 = vpop.permute.xlu1 %1556 }
 0x356   : > { %v5828_v38 = vpack.c.bf16 %v2788_v19, %v2781_v50  ;;  %v2295_v50 = vsel %vm2266_vm5, %v2262_v2, %v5760_v31  ;;  %v2246_v31 = vsel %vm257_vm2, %v4034_v8, %v6188_v34  ;;  %v4035_v2 = vld [vmem:[#allocation2 + $0x158] sm:$0xff] }
 0x357   : > { %v2328_v19 = vsel %vm2299_vm4, %v2295_v50, %v1555_v18  ;;  %v2263_v18 = vsel %vm257_vm2, %v4035_v2, %v5762_v25  ;;  %v6190_v2 = vld [vmem:[#allocation7_spill] sm:$0xff] }
 0x358   : > { %v1651_v4 = vpop.permute.xlu0 %1650  ;;  %v2361_v27 = vsel %vm2332_vm6, %v2328_v19, %v1683_v39 }
 0x359   : > { %v1525_v26 = vpop.permute.xlu1 %1524 }
 0x35c   : > { %v1811_v1 = vpop.permute.xlu0 %1810 }
 0x35d   : > { %v1685_v62 = vpop.permute.xlu1 %1684  ;;  %v2394_v56 = vsel %vm2365_vm7, %v2361_v27, %v1811_v1  ;;  %v2279_v27 = vsel %vm2266_vm5, %v2246_v31, %v5786_v22  ;;  %v4036_v31 = vld [vmem:[#allocation2 + $0x98] sm:$0xff] }
 0x360   : > { %v1779_v53 = vpop.permute.xlu0 %1778 }
 0x361   : > { %v1653_v0 = vpop.permute.xlu1 %1652 }
 0x364   : > { %v1939_v40 = vpop.permute.xlu0 %1938 }
 0x365   : > { %v1813_v57 = vpop.permute.xlu1 %1812  ;;  %v2427_v23 = vsel %vm2398_vm8, %v2394_v56, %v1939_v40  ;;  %v2296_v56 = vsel %vm2266_vm5, %v2263_v18, %v1429_v46  ;;  %v2312_v40 = vsel %vm2299_vm4, %v2279_v27, %v1523_v30 }
 0x368   : > { %v1907_v17 = vpop.permute.xlu0 %1906 }
 0x369   : > { %v1781_v63 = vpop.permute.xlu1 %1780 }
 0x36c   : > { %v2067_v10 = vpop.permute.xlu0 %2066 }
 0x36d   : > { %v1941_v51 = vpop.permute.xlu1 %1940  ;;  %v2460_v42 = vsel %vm2431_vm9, %v2427_v23, %v2067_v10  ;;  %v2345_v10 = vsel %vm2332_vm6, %v2312_v40, %v1651_v4 }
 0x370   : > { %v2035_v41 = vpop.permute.xlu0 %2034 }
 0x371   : > { %v1909_v59 = vpop.permute.xlu1 %1908 }
 0x374   : > { %v2195_v11 = vpop.permute.xlu0 %2194 }
 0x375   : > { %v2069_v48 = vpop.permute.xlu1 %2068  ;;  %v2493_v54 = vsel %vm2464_vm10, %v2460_v42, %v2195_v11  ;;  %v2329_v42 = vsel %vm2299_vm4, %v2296_v56, %v1557_v15 }
 0x376   : > { %v2587_v39 = vsel %vm2498_vm11, %v2493_v54, 0  ;;  %v2362_v50 = vsel %vm2332_vm6, %v2329_v42, %v1685_v62  ;;  %v2378_v54 = vsel %vm2365_vm7, %v2345_v10, %v1779_v53  ;;  %v2247_v53 = vsel %vm257_vm2, %v4036_v31, %v6190_v2 }
 0x377   : > { %v2683_v23 = vand.u32 4294901760, %v2587_v39  ;;  %v2395_v22 = vsel %vm2365_vm7, %v2362_v50, %v1813_v57  ;;  %v2411_v46 = vsel %vm2398_vm8, %v2378_v54, %v1907_v17 }
 0x378   : > { %v5850_v11 = vpop.permute.xlu0 %1302  ;;  %v2428_v19 = vsel %vm2398_vm8, %v2395_v22, %v1941_v51  ;;  %v2444_v30 = vsel %vm2431_vm9, %v2411_v46, %v2035_v41  ;;  %v2280_v51 = vsel %vm2266_vm5, %v2247_v53, %v5817_v43 }
 0x379   : > { %v2037_v1 = vpop.permute.xlu1 %2036  ;;  %v5854_v25 = vsub.f32 %v2587_v39, %v2683_v23  ;;  %v2461_v15 = vsel %vm2431_vm9, %v2428_v19, %v2069_v48  ;;  %v2313_v48 = vsel %vm2299_vm4, %v2280_v51, %v1525_v26 }
 0x37a   : > { %v2346_v40 = vsel %vm2332_vm6, %v2313_v48, %v1653_v0 }
 0x37b   : > { %6189 = vst [vmem:[#allocation4_spill] sm:$0xff] %v5854_v25  ;;  %v2905_v39 = vand.u32 4294901760, %v5854_v25  ;;  %v2379_v50 = vsel %vm2365_vm7, %v2346_v40, %v1781_v63 }
 0x37c   : > { %v2163_v8 = vpop.permute.xlu0 %2162  ;;  %v2412_v43 = vsel %vm2398_vm8, %v2379_v50, %v1909_v59 }
 0x37d   : > { %v2197_v34 = vpop.permute.xlu1 %2196  ;;  %v2477_v4 = vsel %vm2464_vm10, %v2444_v30, %v2163_v8  ;;  %v2445_v46 = vsel %vm2431_vm9, %v2412_v43, %v2037_v1  ;;  %v2906_v30 = vsub.f32 %v5854_v25, %v2905_v39  ;;  %v935_v25 = vld [vmem:[#allocation2 + $0xa8] sm:$0xff] }
 0x37e   : > { %v2494_v62 = vsel %vm2464_vm10, %v2461_v15, %v2197_v34  ;;  %v2539_v57 = vsel %vm2498_vm11, %v2477_v4, 0  ;;  %v2248_v49 = vsel %vm257_vm2, %v935_v25, %v6199_v44 }
 0x37f   : > { %v2590_v17 = vsel %vm2498_vm11, %v2494_v62, 0  ;;  %v2635_v41 = vand.u32 4294901760, %v2539_v57  ;;  %v2907_v31 = vand.u32 4294901760, %v2906_v30 }
 0x380   : > { %v2686_v18 = vand.u32 4294901760, %v2590_v17  ;;  %v1431_v27 = vpop.permute.xlu0 %1430 }
 0x381   : > { %v5872_v56 = vpop.permute.xlu1 %1304  ;;  %v5875_v42 = vsub.f32 %v2539_v57, %v2635_v41 }
 0x382   : > { %v5877_v10 = vsub.f32 %v2590_v17, %v2686_v18  ;;  %v5880_v54 = vpack.c.bf16 %v2686_v18, %v2683_v23 }
 0x383   : > { %6191 = vst [vmem:[#allocation7_spill] sm:$0xff] %v5875_v42  ;;  %v2793_v8 = vand.u32 4294901760, %v5875_v42 }
 0x384   : > { %6192 = vst [vmem:[#allocation44_spill] sm:$0xff] %v5877_v10  ;;  %6193 = vst [vmem:[#allocation45_spill] sm:$0xff] %v5880_v54  ;;  %v2912_v22 = vand.u32 4294901760, %v5877_v10  ;;  %3813 = vmatprep.subr.bf16.mxu0 %v5880_v54  ;;  %3909 = vmatprep.subr.bf16.mxu1 %v5880_v54  ;;  %v1399_v0 = vpop.permute.xlu0 %1398 }
 0x385   : > { %v2165_v19 = vpop.permute.xlu1 %2164  ;;  %v2794_v17 = vsub.f32 %v5875_v42, %v2793_v8 }
 0x386   : > { %v2478_v63 = vsel %vm2464_vm10, %v2445_v46, %v2165_v19  ;;  %v2913_v23 = vsub.f32 %v5877_v10, %v2912_v22  ;;  %v5893_v15 = vpack.c.bf16 %v2912_v22, %v2905_v39 }
 0x387   : > { %v2542_v59 = vsel %vm2498_vm11, %v2478_v63, 0  ;;  %v2795_v50 = vand.u32 4294901760, %v2794_v17 }
 0x388   : > { %6194 = vst [vmem:[#allocation46_spill] sm:$0xff] %v5893_v15  ;;  %v2638_v34 = vand.u32 4294901760, %v2542_v59  ;;  %v2914_v1 = vand.u32 4294901760, %v2913_v23  ;;  %v1559_v4 = vpop.permute.xlu0 %1558 }
 0x389   : > { %v1433_v62 = vpop.permute.xlu1 %1432 }
 0x38a   : > { %v5896_v2 = vpack.c.bf16 %v2638_v34, %v2635_v41  ;;  %v5898_v53 = vsub.f32 %v2542_v59, %v2638_v34  ;;  %v5900_v57 = vpack.c.bf16 %v2914_v1, %v2907_v31 }
 0x38c   : > { %6195 = vst [vmem:[#allocation47_spill] sm:$0xff] %v5896_v2  ;;  %6196 = vst [vmem:[#allocation48_spill] sm:$0xff] %v5898_v53  ;;  %v2800_v51 = vand.u32 4294901760, %v5898_v53  ;;  %3815 = vmatpush3.bf16.xpose.msra.mxu0 %v5896_v2  ;;  %3911 = vmatpush3.bf16.xpose.msra.mxu1 %v5896_v2  ;;  %v1527_v48 = vpop.permute.xlu0 %1526 }
 0x38d   : > { %v1401_v39 = vpop.permute.xlu1 %1400 }
 0x38e   : > { %v2801_v41 = vsub.f32 %v5898_v53, %v2800_v51  ;;  %v5909_v40 = vpack.c.bf16 %v2800_v51, %v2793_v8  ;;  %v4037_v8 = vld [vmem:[#allocation2 + $0x168] sm:$0xff] }
 0x38f   : > { %v2264_v17 = vsel %vm257_vm2, %v4037_v8, %v5850_v11  ;;  %v2281_v11 = vsel %vm2266_vm5, %v2248_v49, %v1399_v0  ;;  %v4038_v8 = vld [vmem:[#allocation2 + $0x170] sm:$0xff] }
 0x390   : > { %6197 = vst [vmem:[#allocation49_spill] sm:$0xff] %v5909_v40  ;;  %v2802_v43 = vand.u32 4294901760, %v2801_v41  ;;  %v1687_v22 = vpop.permute.xlu0 %1686  ;;  %v2297_v51 = vsel %vm2266_vm5, %v2264_v17, %v1431_v27  ;;  %v936_v0 = vld [vmem:[#allocation2 + $0xb0] sm:$0xff] }
 0x391   : > { %v1561_v46 = vpop.permute.xlu1 %1560 }
 0x392   : > { %v5911_v19 = vpack.c.bf16 %v2802_v43, %v2795_v50  ;;  %v2330_v43 = vsel %vm2299_vm4, %v2297_v51, %v1559_v4  ;;  %v2265_v4 = vsel %vm257_vm2, %v4038_v8, %v5872_v56 }
 0x393   : > { %v2363_v54 = vsel %vm2332_vm6, %v2330_v43, %v1687_v22  ;;  %v2314_v22 = vsel %vm2299_vm4, %v2281_v11, %v1527_v48  ;;  %v6200_v48 = vld [vmem:[#allocation8_spill] sm:$0xff] }
 0x394   : > { %6198 = vst [vmem:[#allocation50_spill] sm:$0xff] %v5911_v19  ;;  %v1655_v30 = vpop.permute.xlu0 %1654 }
 0x395   : > { %v1529_v63 = vpop.permute.xlu1 %1528  ;;  %v2347_v44 = vsel %vm2332_vm6, %v2314_v22, %v1655_v30 }
 0x398   : > { %v1815_v23 = vpop.permute.xlu0 %1814 }
 0x399   : > { %v1689_v59 = vpop.permute.xlu1 %1688  ;;  %v2396_v10 = vsel %vm2365_vm7, %v2363_v54, %v1815_v23  ;;  %v2298_v54 = vsel %vm2266_vm5, %v2265_v4, %v1433_v62 }
 0x39a   : > { %v2331_v25 = vsel %vm2299_vm4, %v2298_v54, %v1561_v46 }
 0x39c   : > { %v1783_v34 = vpop.permute.xlu0 %1782 }
 0x39d   : > { %v1657_v1 = vpop.permute.xlu1 %1656 }
 0x3a0   : > { %v1943_v31 = vpop.permute.xlu0 %1942 }
 0x3a1   : > { %v1817_v18 = vpop.permute.xlu1 %1816  ;;  %v2429_v40 = vsel %vm2398_vm8, %v2396_v10, %v1943_v31  ;;  %v2380_v10 = vsel %vm2365_vm7, %v2347_v44, %v1783_v34 }
 0x3a4   : > { %v1911_v26 = vpop.permute.xlu0 %1910 }
 0x3a5   : > { %v1785_v2 = vpop.permute.xlu1 %1784 }
 0x3a8   : > { %v2071_v42 = vpop.permute.xlu0 %2070 }
 0x3a9   : > { %v1945_v53 = vpop.permute.xlu1 %1944  ;;  %v2462_v27 = vsel %vm2431_vm9, %v2429_v40, %v2071_v42  ;;  %v2364_v42 = vsel %vm2332_vm6, %v2331_v25, %v1689_v59  ;;  %v2413_v40 = vsel %vm2398_vm8, %v2380_v10, %v1911_v26 }
 0x3aa   : > { %v2397_v62 = vsel %vm2365_vm7, %v2364_v42, %v1817_v18 }
 0x3ab   : > { %v2430_v34 = vsel %vm2398_vm8, %v2397_v62, %v1945_v53  ;;  %v6215_v62 = vld [vmem:[#allocation18_spill] sm:$0xff] }
 0x3ac   : > { %v2039_v41 = vpop.permute.xlu0 %2038 }
 0x3ad   : > { %v1913_v50 = vpop.permute.xlu1 %1912  ;;  %v2446_v30 = vsel %vm2431_vm9, %v2413_v40, %v2039_v41  ;;  %v6211_v40 = vld [vmem:[#allocation13_spill] sm:$0xff] }
 0x3b0   : > { %v2199_v19 = vpop.permute.xlu0 %2198 }
 0x3b1   : > { %v2073_v15 = vpop.permute.xlu1 %2072  ;;  %v2495_v17 = vsel %vm2464_vm10, %v2462_v27, %v2199_v19  ;;  %v2249_v19 = vsel %vm257_vm2, %v936_v0, %v6200_v48  ;;  %v3453_v0 = vld [vmem:[%s6097_s4] sm:$0xf]  ;;  %v6213_v48 = vld [vmem:[#allocation15_spill] sm:$0xff] }
 0x3b2   : > { %v2593_v56 = vsel %vm2498_vm11, %v2495_v17, 0  ;;  %v2282_v46 = vsel %vm2266_vm5, %v2249_v19, %v1401_v39  ;;  %v2463_v26 = vsel %vm2431_vm9, %v2430_v34, %v2073_v15  ;;  %v6218_v34 = vld [vmem:[#allocation16_spill] sm:$0xff] }
 0x3b3   : > { %v2315_v51 = vsel %vm2299_vm4, %v2282_v46, %v1529_v63  ;;  %v2689_v59 = vand.u32 4294901760, %v2593_v56  ;;  %v6217_v46 = vld [vmem:[#allocation20_spill] sm:$0xff] }
 0x3b4   : > { %v2167_v23 = vpop.permute.xlu0 %2166  ;;  %v2348_v11 = vsel %vm2332_vm6, %v2315_v51, %v1657_v1  ;;  %v6220_v51 = vld [vmem:[#allocation19_spill] sm:$0xff] }
 0x3b5   : > { %v2041_v49 = vpop.permute.xlu1 %2040  ;;  %v2479_v31 = vsel %vm2464_vm10, %v2446_v30, %v2167_v23  ;;  %v2381_v18 = vsel %vm2365_vm7, %v2348_v11, %v1785_v2  ;;  %v5950_v4 = vsub.f32 %v2593_v56, %v2689_v59  ;;  %v6212_v56 = vld [vmem:[#allocation17_spill] sm:$0xff]  ;;  %v6224_v11 = vld [vmem:[#allocation24_spill] sm:$0xff] }
 0x3b6   : > { %v2545_v41 = vsel %vm2498_vm11, %v2479_v31, 0  ;;  %v2414_v53 = vsel %vm2398_vm8, %v2381_v18, %v1913_v50  ;;  %v6214_v19 = vpack.c.bf16 %v6212_v56, %v6213_v48  ;;  %v6216_v30 = vld [vmem:[#allocation41_spill] sm:$0xff]  ;;  %v6219_v31 = vpack.c.bf16 %v6217_v46, %v6218_v34  ;;  %v6226_v18 = vld [vmem:[#allocation22_spill] sm:$0xff] }
 0x3b7   : > { %v2447_v63 = vsel %vm2431_vm9, %v2414_v53, %v2041_v49  ;;  %v2641_v15 = vand.u32 4294901760, %v2545_v41  ;;  %v6229_v53 = vld [vmem:[#allocation29_spill] sm:$0xff] }
 0x3b9   : > { %v2201_v43 = vpop.permute.xlu1 %2200  ;;  %v5963_v25 = vsub.f32 %v2545_v41, %v2641_v15 }
 0x3ba   : > { %v2496_v27 = vsel %vm2464_vm10, %v2463_v26, %v2201_v43  ;;  %v6222_v26 = vld [vmem:[#allocation21_spill] sm:$0xff] }
 0x3bb   : > { %v2596_v39 = vsel %vm2498_vm11, %v2496_v27, 0  ;;  %v6225_v27 = vld [vmem:[#allocation26_spill] sm:$0xff] }
 0x3bc   : > { %v2692_v8 = vand.u32 4294901760, %v2596_v39  ;;  %v6227_v41 = vpack.c.bf16 %v6225_v27, %v6226_v18 }
 0x3bd   : > { %v2169_v22 = vpop.permute.xlu1 %2168 }
 0x3be   : > { %v5953_v17 = vsub.f32 %v2596_v39, %v2692_v8  ;;  %v2480_v1 = vsel %vm2464_vm10, %v2447_v63, %v2169_v22  ;;  %v5956_v54 = vpack.c.bf16 %v2692_v8, %v2689_v59  ;;  %v6221_v59 = vld [vmem:[#allocation23_spill] sm:$0xff]  ;;  %v6228_v39 = vld [vmem:[#allocation25_spill] sm:$0xff]  ;;  %v6232_v22 = vld [vmem:[#allocation30_spill] sm:$0xff] }
 0x3bf   : > { %v2548_v2 = vsel %vm2498_vm11, %v2480_v1, 0  ;;  %v6223_v43 = vpack.c.bf16 %v6221_v59, %v6222_v26  ;;  %v6230_v8 = vld [vmem:[#allocation27_spill] sm:$0xff]  ;;  %v6234_v1 = vld [vmem:[#allocation28_spill] sm:$0xff] }
 0x3c0   : > { %v2644_v44 = vand.u32 4294901760, %v2548_v2  ;;  %3817 = vmatprep.subr.bf16.mxu0 %v5956_v54  ;;  %3913 = vmatprep.subr.bf16.mxu1 %v5956_v54  ;;  %v3880_v50 = vpack.c.bf16 %v5953_v17, %v5950_v4  ;;  %v6231_v63 = vpack.c.bf16 %v6229_v53, %v6230_v8 }
 0x3c2   : > { %v5965_v10 = vpack.c.bf16 %v2644_v44, %v2641_v15  ;;  %v5967_v23 = vsub.f32 %v2548_v2, %v2644_v44  ;;  %v6233_v15 = vld [vmem:[#allocation32_spill] sm:$0xff]  ;;  %v6236_v44 = vld [vmem:[#allocation31_spill] sm:$0xff] }
 0x3c3   : > { %v6235_v2 = vpack.c.bf16 %v6233_v15, %v6234_v1 }
 0x3c4   : > { %3819 = vmatpush3.bf16.xpose.msra.mxu0 %v5965_v10  ;;  %3915 = vmatpush3.bf16.xpose.msra.mxu1 %v5965_v10  ;;  %v3882_v49 = vpack.c.bf16 %v5967_v23, %v5963_v25 }
 0x3c5   : > { %3821 = vmatprep.subr.bf16.mxu0 %v4886_v13  ;;  %3917 = vmatprep.subr.bf16.mxu1 %v4871_v32  ;;  %v4057_v32 = vmov 0   ;;  %v4058_v13 = vmov 1  }
 0x3c6   : > { %4019 = vset.pattern.permute.xlu0 %v4057_v32  ;;  %4020 = vset.pattern.permute.xlu1 %v4058_v13  ;;  %v6238_v32 = vld [vmem:[#allocation33_spill] sm:$0xff] }
 0x3c7   : > { %3456 = vperm.xlu0 %4019, %v3453_v0   ;;  %3462 = vperm.xlu1 %4020, %v3453_v0   ;;  %v6237_v0 = vld [vmem:[#allocation35_spill] sm:$0xff] }
 0x3cb   : > { %3587 = vmatmul.mubr.f32.vlgmr.msra.gmra.mrb[2].mxu0 %v5825_v6  ;;  %3689 = vmatmul.mubr.f32.vlgmr.msra.gmra.mrb[2].mxu1 %v5807_v7  ;;  %v6204_v7 = vld [vmem:[#allocation11_spill] sm:$0xff]  ;;  %v6207_v6 = vld [vmem:[#allocation12_spill] sm:$0xff] }
 0x3cc   : > { %3823 = vmatpush3.bf16.xpose.msra.mxu0 %v4905_v21  ;;  %3919 = vmatpush3.bf16.xpose.msra.mxu1 %v4899_v29  ;;  %v2926_v29 = vand.u32 4294901760, %v5953_v17  ;;  %v2919_v21 = vand.u32 4294901760, %v5950_v4 }
 0x3cd   : > { %3825 = vmatprep.subr.bf16.mxu0 %v5077_v14  ;;  %3921 = vmatprep.subr.bf16.mxu1 %v5062_v33  ;;  %v6201_v14 = vld [vmem:[#allocation46_spill] sm:$0xff] }
 0x3ce   : > { %3620 = vmatprep.mubr.f32.mxu0 %v5791_v47  ;;  %3722 = vmatprep.mubr.f32.mxu1 %v5791_v47  ;;  %v2927_v33 = vsub.f32 %v5953_v17, %v2926_v29 }
 0x3cf   : > { %4021 = vset.pattern.permute.xlu0 %v4058_v13  ;;  %v6239_v13 = vpack.c.bf16 %v6237_v0, %v6238_v32 }
 0x3d4   : > { %3827 = vmatpush3.bf16.xpose.msra.mxu0 %v5096_v52  ;;  %3923 = vmatpush3.bf16.xpose.msra.mxu1 %v5090_v5  ;;  %v2920_v5 = vsub.f32 %v5950_v4, %v2919_v21  ;;  %v2814_v52 = vand.u32 4294901760, %v5967_v23 }
 0x3d5   : > { %3829 = vmatprep.subr.bf16.mxu0 %v5270_v37  ;;  %3925 = vmatprep.subr.bf16.mxu1 %v5255_v55  ;;  %v2928_v55 = vand.u32 4294901760, %v2927_v33  ;;  %v2807_v37 = vand.u32 4294901760, %v5963_v25  ;;  %v6242_v33 = vld [vmem:[#allocation34_spill] sm:$0xff] }
 0x3dc   : > { %3831 = vmatpush3.bf16.xpose.msra.mxu0 %v5289_v20  ;;  %3927 = vmatpush3.bf16.xpose.msra.mxu1 %v5283_v24  ;;  %v2921_v24 = vand.u32 4294901760, %v2920_v5  ;;  %v2815_v20 = vsub.f32 %v5967_v23, %v2814_v52  ;;  %v6244_v5 = vld [vmem:[#allocation37_spill] sm:$0xff] }
 0x3dd   : > { %3833 = vmatprep.subr.bf16.mxu0 %v5462_v35  ;;  %3929 = vmatprep.subr.bf16.mxu1 %v5447_v16  ;;  %v3944_v35 = vpack.c.bf16 %v2926_v29, %v2919_v21  ;;  %v6240_v29 = vld [vmem:[#allocation36_spill] sm:$0xff]  ;;  %v6241_v21 = vld [vmem:[#allocation38_spill] sm:$0xff] }
 0x3de   : > { %v3848_v16 = vpack.c.bf16 %v2928_v55, %v2921_v24  ;;  %v6246_v55 = vld [vmem:[#allocation3_spill] sm:$0xff]  ;;  %v6248_v24 = vld [vmem:[#allocation40_spill] sm:$0xff] }
 0x3e4   : > { %3835 = vmatpush3.bf16.xpose.msra.mxu0 %v5481_v60  ;;  %3931 = vmatpush3.bf16.xpose.msra.mxu1 %v5475_v3  ;;  %v2808_v3 = vsub.f32 %v5963_v25, %v2807_v37  ;;  %v6202_v60 = vld [vmem:[#allocation50_spill] sm:$0xff] }
 0x3e5   : > { %3837 = vmatprep.subr.bf16.mxu0 %v5650_v9  ;;  %3933 = vmatprep.subr.bf16.mxu1 %v5638_v12  ;;  %v6203_v12 = vld [vmem:[#allocation49_spill] sm:$0xff]  ;;  %v2816_v9 = vand.u32 4294901760, %v2815_v20  ;;  %v6249_v20 = vld [vmem:[#allocation43_spill] sm:$0xff] }
 0x3ec   : > { %3839 = vmatpush3.bf16.xpose.msra.mxu0 %v5671_v45  ;;  %3935 = vmatpush3.bf16.xpose.msra.mxu1 %v5663_v28  ;;  %v2809_v28 = vand.u32 4294901760, %v2808_v3  ;;  %v6252_v3 = vld [vmem:[#allocation42_spill] sm:$0xff] }
 0x3ed   : > { %3841 = vmatprep.subr.bf16.mxu0 %v5809_v61  ;;  %3937 = vmatprep.subr.bf16.mxu1 %v5796_v36  ;;  %v3946_v36 = vpack.c.bf16 %v2814_v52, %v2807_v37  ;;  %v6205_v61 = vld [vmem:[#allocation9_spill] sm:$0xff]  ;;  %v6245_v52 = vld [vmem:[#allocation39_spill] sm:$0xff] }
 0x3ee   : > { %v3850_v45 = vpack.c.bf16 %v2816_v9, %v2809_v28  ;;  %v6247_v37 = vpack.c.bf16 %v6245_v52, %v6246_v55  ;;  %v6256_v28 = vld [vmem:[#allocation45_spill] sm:$0xff] }
 0x3f4   : > { %3843 = vmatpush3.bf16.xpose.msra.mxu0 %v5828_v38  ;;  %3939 = vmatpush3.bf16.xpose.msra.mxu1 %v5823_v58  ;;  %v6206_v58 = vpack.c.bf16 %v6204_v7, %v6205_v61  ;;  %v6208_v38 = vld [vmem:[#allocation14_spill] sm:$0xff]  ;;  %v6260_v61 = vld [vmem:[#allocation47_spill] sm:$0xff] }
 0x3f5   : > { %3845 = vmatprep.subr.bf16.mxu0 %v5900_v57  ;;  %3941 = vmatprep.subr.bf16.mxu1 %v6201_v14  ;;  %v6209_v57 = vld [vmem:[#allocation10_spill] sm:$0xff]  ;;  %v6243_v14 = vpack.c.bf16 %v6241_v21, %v6242_v33 }
 0x3f6   : > { %v6210_v42 = vpack.c.bf16 %v6208_v38, %v6209_v57 }
 0x3fc   : > { %3847 = vmatpush3.bf16.xpose.msra.mxu0 %v6202_v60  ;;  %3943 = vmatpush3.bf16.xpose.msra.mxu1 %v6203_v12  ;;  %v6253_v60 = vld [vmem:[#allocation44_spill] sm:$0xff] }
 0x3fd   : > { %3849 = vmatprep.subr.bf16.mxu0 %v3848_v16  ;;  %3945 = vmatprep.subr.bf16.mxu1 %v3944_v35  ;;  %v6250_v16 = vld [vmem:[#allocation6_spill] sm:$0xff]  ;;  %v6254_v12 = vld [vmem:[#allocation4_spill] sm:$0xff] }
 0x3fe   : > { %v6251_v35 = vpack.c.bf16 %v6249_v20, %v6250_v16  ;;  %v6255_v9 = vpack.c.bf16 %v6253_v60, %v6254_v12 }
 0x404   : > { %3851 = vmatpush3.bf16.xpose.msra.mxu0 %v3850_v45  ;;  %3947 = vmatpush3.bf16.xpose.msra.mxu1 %v3946_v36  ;;  %v6257_v45 = vld [vmem:[#allocation48_spill] sm:$0xff]  ;;  %v6258_v36 = vld [vmem:[#allocation7_spill] sm:$0xff] }
 0x405   : > { %3853 = vmatprep.subr.bf16.mxu0 %v6206_v58  ;;  %3949 = vmatprep.subr.bf16.mxu1 %v6207_v6  ;;  %v6259_v7 = vpack.c.bf16 %v6257_v45, %v6258_v36 }
 0x40b   : > { %3621 = vmatmul.mubr.f32.vlgmr.msra.gmra.mrb[2].mxu0 %v5791_v47  ;;  %3723 = vmatmul.mubr.f32.vlgmr.msra.gmra.mrb[2].mxu1 %v5791_v47 }
 0x40c   : > { %3855 = vmatpush3.bf16.xpose.msra.mxu0 %v6210_v42  ;;  %3951 = vmatpush3.bf16.xpose.msra.mxu1 %v6211_v40 }
 0x40d   : > { %3857 = vmatprep.subr.bf16.mxu0 %v6214_v19  ;;  %3953 = vmatprep.subr.bf16.mxu1 %v6215_v62 }
 0x40e   : > { %3654 = vmatprep.mubr.f32.mxu0 %v6216_v30  ;;  %3756 = vmatprep.mubr.f32.mxu1 %v5791_v47 }
 0x414   : > { %3859 = vmatpush3.bf16.xpose.msra.mxu0 %v6219_v31  ;;  %3955 = vmatpush3.bf16.xpose.msra.mxu1 %v6220_v51 }
 0x415   : > { %3861 = vmatprep.subr.bf16.mxu0 %v6223_v43  ;;  %3957 = vmatprep.subr.bf16.mxu1 %v6224_v11 }
 0x41c   : > { %3863 = vmatpush3.bf16.xpose.msra.mxu0 %v6227_v41  ;;  %3959 = vmatpush3.bf16.xpose.msra.mxu1 %v6228_v39 }
 0x41d   : > { %3865 = vmatprep.subr.bf16.mxu0 %v6231_v63  ;;  %3961 = vmatprep.subr.bf16.mxu1 %v6232_v22 }
 0x424   : > { %3867 = vmatpush3.bf16.xpose.msra.mxu0 %v6235_v2  ;;  %3963 = vmatpush3.bf16.xpose.msra.mxu1 %v6236_v44 }
 0x425   : > { %3869 = vmatprep.subr.bf16.mxu0 %v6239_v13  ;;  %3965 = vmatprep.subr.bf16.mxu1 %v6240_v29 }
 0x42c   : > { %3871 = vmatpush3.bf16.xpose.msra.mxu0 %v6243_v14  ;;  %3967 = vmatpush3.bf16.xpose.msra.mxu1 %v6244_v5 }
 0x42d   : > { %3873 = vmatprep.subr.bf16.mxu0 %v6247_v37  ;;  %3969 = vmatprep.subr.bf16.mxu1 %v6248_v24 }
 0x434   : > { %3875 = vmatpush3.bf16.xpose.msra.mxu0 %v6251_v35  ;;  %3971 = vmatpush3.bf16.xpose.msra.mxu1 %v6252_v3 }
 0x435   : > { %3877 = vmatprep.subr.bf16.mxu0 %v6255_v9  ;;  %3973 = vmatprep.subr.bf16.mxu1 %v6256_v28 }
 0x43c   : > { %3879 = vmatpush3.bf16.xpose.msra.mxu0 %v6259_v7  ;;  %3975 = vmatpush3.bf16.xpose.msra.mxu1 %v6260_v61 }
 0x43d   : > { %3881 = vmatprep.subr.bf16.mxu0 %v3880_v50  ;;  %3977 = vmatprep.subr.bf16.mxu1 %v5956_v54 }
 0x444   : > { %3883 = vmatpush3.bf16.xpose.msra.mxu0 %v3882_v49  ;;  %3979 = vmatpush3.bf16.xpose.msra.mxu1 %v5965_v10 }
 0x446   : > { %v3457_v58 = vpop.permute.xlu0 %3456  ;;  %v3463_v50 = vpop.permute.xlu1 %3462 }
 0x44b   : > { %3655 = vmatmul.mubr.f32.vlgmr.msra.gmra.mrb[2].mxu0 %v6216_v30  ;;  %3757 = vmatmul.mubr.f32.vlgmr.msra.gmra.mrb[2].mxu1 %v5791_v47 }
 0x51e   : > { %v3070_v6 = vpop.f32.mrb[2].mxu0  ;;  %v3448_v38 = vpop.f32.mrb[2].mxu1 }
 0x51f   : > { %v3981_v57 = vadd.f32 %v3448_v38, %v3070_v6  ;;  %v3072_v42 = vpop.f32.mrb[3].mxu0  ;;  %v3450_v4 = vpop.f32.mrb[3].mxu1 }
 0x520   : > { %v3982_v17 = vadd.f32 %v3450_v4, %v3072_v42 }
 0x521   : > { %v3459_v54 = vmul.f32 %v3981_v57, %v3457_v58 }
 0x522   : > { %v3460_v40 = vmul.f32 %v3982_v17, %v3457_v58 }
 0x523   : > { %v3465_v56 = vadd.f32 %v3463_v50, %v3459_v54 }
 0x524   : > { %v3466_v25 = vadd.f32 %v3463_v50, %v3460_v40 }
 0x525   : > { %v3467_v23 = vmax.f32 %v3465_v56, 0.0 }
 0x526   : > { %v3468_v49 = vmax.f32 %v3466_v25, 0.0 }
 0x528   : > { %v3471_v47 = vcombine.low %v3467_v23, %v3468_v49 }
 0x52a   : > { %3473 = vst [vmem:[%s224_s20] sm:$0xff] %v3471_v47 }
 0x52b PF: > { %s15_s18 = sadd.s32 1, %s4045_s18  }
 0x52c   : > { %p12_p4 = scmp.ge.s32.totalorder %s15_s18, 4  }
 0x52e   :  { %14 = sbr.rel (!%p12_p4) target bundleno = 1 (0x1), region = 72 }

</bundles_post_ra>
